<compile_context>
chip_gen: v7x
topology: tpu7x:2x2x1
jax: 0.10.0
libtpu: 0.0.40
codegen_flags: <defaults>
</compile_context>

<pallas_src>
import functools

import jax
import jax.numpy as jnp
from jax.experimental import pallas as pl
from jax.experimental.pallas import tpu as pltpu

EPS = 1e-5  # matches AdaptiveInstanceNorm2d default


# ----------------------------- Pallas kernel -----------------------------
def _resblocks_kernel(x_ref, wmat_ref, bias_ref, gamma_ref, beta_ref,
                      fold_ref, bcast_ref, o_ref, *, num_blocks, B, H, WC):
    """Whole ResidualBlocks forward in one invocation.

    x_ref     : (B, H, W*C)            activation, lane-dense slab
    wmat_ref  : (nb, 2, 3*W*C, W*C)    banded conv weights (per block, per conv)
    bias_ref  : (nb, 2, 1, W*C)        conv bias, channel-tiled across W
    gamma_ref : (nb, 2, B, W*C)        AdaIN gamma, channel-tiled across W
    beta_ref  : (nb, 2, B, W*C)        AdaIN beta,  channel-tiled across W
    fold_ref  : (W*C, C)               mean/var fold matrix (includes 1/(H*W))
    bcast_ref : (C, W*C)               per-channel broadcast matrix
    """
    x = x_ref[...].astype(jnp.float32)            # (B, H, WC)
    fold = fold_ref[...]                          # (WC, C)
    bcast = bcast_ref[...]                        # (C, WC)

    def conv3x3(a, wmat, bias):
        # Rows h-1 / h / h+1 (zero at the H edges) stacked along the
        # contraction axis; W, Cin and the 3 horizontal taps live inside the
        # banded weight matrix.  One matmul per conv, batch folded into M.
        zrow = jnp.zeros_like(a[:, :1, :])
        up = jnp.concatenate([zrow, a[:, :-1, :]], axis=1)      # x[h-1]
        down = jnp.concatenate([a[:, 1:, :], zrow], axis=1)     # x[h+1]
        patch = jnp.concatenate([up, a, down], axis=-1)         # (B, H, 3*WC)
        y = jnp.dot(patch.reshape(B * H, 3 * WC), wmat,
                    preferred_element_type=jnp.float32)         # (B*H, WC)
        return y.reshape(B, H, WC) + bias[None]                 # bias: (1, WC)

    def adain(y, gamma, beta):
        # Instance norm over (H, W) per (b, c): biased variance + affine.
        mean_c = jnp.dot(jnp.sum(y, axis=1), fold,
                         preferred_element_type=jnp.float32)    # (B, C)
        mean = jnp.dot(mean_c, bcast,
                       preferred_element_type=jnp.float32)[:, None, :]
        d = y - mean
        var_c = jnp.dot(jnp.sum(d * d, axis=1), fold,
                        preferred_element_type=jnp.float32)     # (B, C)
        inv = jnp.dot(jax.lax.rsqrt(var_c + EPS), bcast,
                      preferred_element_type=jnp.float32)[:, None, :]
        return d * inv * gamma[:, None, :] + beta[:, None, :]

    for blk in range(num_blocks):          # static unroll; num_blocks is small
        res = x
        y = conv3x3(x, wmat_ref[blk, 0], bias_ref[blk, 0])
        y = jnp.maximum(adain(y, gamma_ref[blk, 0], beta_ref[blk, 0]), 0.0)
        y = conv3x3(y, wmat_ref[blk, 1], bias_ref[blk, 1])
        y = adain(y, gamma_ref[blk, 1], beta_ref[blk, 1])
        x = res + y

    o_ref[...] = x.astype(o_ref.dtype)


# ------------------------- wrapper / weight folding -------------------------
def _build_banded_weight(w, W):
    """Fold (3, 3, Cin, Cout) HWIO conv weights into a (3*W*Cin, W*Cout) banded
    matrix so that the 3x3 conv becomes one matmul over stacked rows."""
    _, _, Cin, Cout = w.shape
    wi = jnp.arange(W)[:, None]        # input column
    wo = jnp.arange(W)[None, :]        # output column
    dx = wi - wo + 1                   # horizontal tap index
    valid = (dx >= 0) & (dx < 3)
    band = w[:, jnp.clip(dx, 0, 2)]                        # (3, Wi, Wo, Cin, Cout)
    band = jnp.where(valid[None, :, :, None, None], band, 0.0)
    band = jnp.transpose(band, (0, 1, 3, 2, 4))            # (3, Wi, Cin, Wo, Cout)
    return band.reshape(3 * W * Cin, W * Cout)


@jax.jit
def residual_blocks_forward(x_nchw, all_params):
    """ResidualBlocks.forward: single fused Pallas kernel; NCHW in / NCHW out."""
    B, C, H, W = x_nchw.shape
    num_blocks = len(all_params)
    WC = W * C

    # NCHW -> lane-dense (B, H, W*C) slab (layout glue only).
    x_slab = jnp.transpose(x_nchw, (0, 2, 3, 1)).reshape(B, H, WC)

    wmats, biases, gammas, betas = [], [], [], []
    for (w1, b1, g1, be1, w2, b2, g2, be2) in all_params:
        wmats.append(jnp.stack([_build_banded_weight(w1, W),
                                _build_banded_weight(w2, W)]))
        biases.append(jnp.stack([jnp.tile(b1, W)[None, :],
                                 jnp.tile(b2, W)[None, :]]))
        gammas.append(jnp.stack([jnp.tile(g1, (1, W)), jnp.tile(g2, (1, W))]))
        betas.append(jnp.stack([jnp.tile(be1, (1, W)), jnp.tile(be2, (1, W))]))
    wmats = jnp.stack(wmats)     # (nb, 2, 3*WC, WC)
    biases = jnp.stack(biases)   # (nb, 2, 1, WC)
    gammas = jnp.stack(gammas)   # (nb, 2, B, WC)
    betas = jnp.stack(betas)     # (nb, 2, B, WC)

    # Channel fold / broadcast matrices for the instance-norm statistics:
    #   fold[w*C + c, c']  = (c == c') / (H*W)
    #   bcast[c, w*C + c'] = (c == c')
    eye = jnp.eye(C, dtype=jnp.float32)
    bcast = jnp.tile(eye, (1, W))            # (C, WC)
    fold = jnp.transpose(bcast) / (H * W)    # (WC, C)

    kernel = functools.partial(_resblocks_kernel, num_blocks=num_blocks,
                               B=B, H=H, WC=WC)
    vmem = pl.BlockSpec(memory_space=pltpu.MemorySpace.VMEM)

    out = pl.pallas_call(
        kernel,
        out_shape=jax.ShapeDtypeStruct((B, H, WC), x_nchw.dtype),
        in_specs=[vmem] * 7,
        out_specs=vmem,
    )(x_slab, wmats, biases, gammas, betas, fold, bcast)

    # (B, H, W*C) -> NCHW
    return jnp.transpose(out.reshape(B, H, W, C), (0, 3, 1, 2))


# ---------------- pure-JAX reference (for verification) ----------------
def _ref_block(x_nhwc, params):
    w1, b1, g1, be1, w2, b2, g2, be2 = params

    def conv(x, w, bias):
        y = jax.lax.conv_general_dilated(
            x, w, window_strides=(1, 1), padding=((1, 1), (1, 1)),
            dimension_numbers=("NHWC", "HWIO", "NHWC"),
            precision=jax.lax.Precision.HIGHEST)
        return y + bias[None, None, None, :]

    def adain(y, g, be):
        mean = jnp.mean(y, axis=(1, 2), keepdims=True)
        var = jnp.mean((y - mean) ** 2, axis=(1, 2), keepdims=True)
        return ((y - mean) * jax.lax.rsqrt(var + EPS)
                * g[:, None, None, :] + be[:, None, None, :])

    y = jnp.maximum(adain(conv(x_nhwc, w1, b1), g1, be1), 0.0)
    y = adain(conv(y, w2, b2), g2, be2)
    return y + x_nhwc


def _ref_forward(x_nchw, all_params):
    x = jnp.transpose(x_nchw, (0, 2, 3, 1))
    for p in all_params:
        x = _ref_block(x, p)
    return jnp.transpose(x, (0, 3, 1, 2))


# ---------------- deterministic parameter construction ----------------
def make_params(key, num_blocks, B, C):
    all_params = []
    for i in range(num_blocks):
        ks = jax.random.split(jax.random.fold_in(key, i), 8)
        w1 = 0.1 * jax.random.normal(ks[0], (3, 3, C, C), jnp.float32)   # HWIO
        b1 = 0.1 * jax.random.normal(ks[1], (C,), jnp.float32)
        g1 = 1.0 + 0.1 * jax.random.normal(ks[2], (B, C), jnp.float32)   # AdaIN gamma
        be1 = 0.1 * jax.random.normal(ks[3], (B, C), jnp.float32)        # AdaIN beta
        w2 = 0.1 * jax.random.normal(ks[4], (3, 3, C, C), jnp.float32)
        b2 = 0.1 * jax.random.normal(ks[5], (C,), jnp.float32)
        g2 = 1.0 + 0.1 * jax.random.normal(ks[6], (B, C), jnp.float32)
        be2 = 0.1 * jax.random.normal(ks[7], (B, C), jnp.float32)
        all_params.append((w1, b1, g1, be1, w2, b2, g2, be2))
    return all_params


if __name__ == "__main__":
    key = jax.random.PRNGKey(0)
    B, C, H, W = 2, 4, 16, 16        # in_channels == out_channels (residual add)
    num_blocks = 2

    key, kx, kp = jax.random.split(key, 3)
    x = jax.random.normal(kx, (B, C, H, W), jnp.float32)   # PyTorch NCHW input
    params = make_params(kp, num_blocks, B, C)

    out = jax.block_until_ready(residual_blocks_forward(x, params))
    ref = jax.block_until_ready(_ref_forward(x, params))

    assert out.shape == (B, C, H, W)
    err = float(jnp.max(jnp.abs(out - ref)))
    assert jnp.allclose(out, ref, rtol=1e-4, atol=2e-4), err

    print("KERNEL_OK")
</pallas_src>

<mosaic_0001>
module attributes {stable_mosaic.version = 11 : i64} {
  func.func @_resblocks_kernel(%arg0: memref<2x16x64xf32, #tpu.memory_space<vmem>>, %arg1: memref<2x2x192x64xf32, #tpu.memory_space<vmem>>, %arg2: memref<2x2x1x64xf32, #tpu.memory_space<vmem>>, %arg3: memref<2x2x2x64xf32, #tpu.memory_space<vmem>>, %arg4: memref<2x2x2x64xf32, #tpu.memory_space<vmem>>, %arg5: memref<64x4xf32, #tpu.memory_space<vmem>>, %arg6: memref<4x64xf32, #tpu.memory_space<vmem>>, %arg7: memref<2x16x64xf32, #tpu.memory_space<vmem>>) attributes {dimension_semantics = [], scalar_prefetch = 0 : i64, scratch_operands = 0 : i64, tpu.core_type = #tpu.core_type<tc>} {
    %c0 = arith.constant 0 : index
    %c0_0 = arith.constant 0 : index
    %c0_1 = arith.constant 0 : index
    %0 = vector.load %arg0[%c0, %c0_0, %c0_1] : memref<2x16x64xf32, #tpu.memory_space<vmem>>, vector<2x16x64xf32>
    %c0_2 = arith.constant 0 : index
    %c0_3 = arith.constant 0 : index
    %1 = vector.load %arg5[%c0_2, %c0_3] : memref<64x4xf32, #tpu.memory_space<vmem>>, vector<64x4xf32>
    %c0_4 = arith.constant 0 : index
    %c0_5 = arith.constant 0 : index
    %2 = vector.load %arg6[%c0_4, %c0_5] : memref<4x64xf32, #tpu.memory_space<vmem>>, vector<4x64xf32>
    %c0_6 = arith.constant 0 : index
    %c0_7 = arith.constant 0 : index
    %c0_8 = arith.constant 0 : index
    %c0_9 = arith.constant 0 : index
    %3 = vector.load %arg1[%c0_6, %c0_7, %c0_8, %c0_9] : memref<2x2x192x64xf32, #tpu.memory_space<vmem>>, vector<1x1x192x64xf32>
    %4 = vector.shape_cast %3 : vector<1x1x192x64xf32> to vector<192x64xf32>
    %c0_10 = arith.constant 0 : index
    %c0_11 = arith.constant 0 : index
    %c0_12 = arith.constant 0 : index
    %c0_13 = arith.constant 0 : index
    %5 = vector.load %arg2[%c0_10, %c0_11, %c0_12, %c0_13] : memref<2x2x1x64xf32, #tpu.memory_space<vmem>>, vector<1x1x1x64xf32>
    %6 = vector.shape_cast %5 : vector<1x1x1x64xf32> to vector<1x64xf32>
    %cst = arith.constant 0.000000e+00 : f32
    %7 = vector.broadcast %cst : f32 to vector<2x1x64xf32>
    %8 = vector.extract_strided_slice %0 {offsets = [0, 0, 0], sizes = [2, 15, 64], strides = [1, 1, 1]} : vector<2x16x64xf32> to vector<2x15x64xf32>
    %9 = tpu.concatenate %7, %8 in 1 : vector<2x1x64xf32>, vector<2x15x64xf32> -> vector<2x16x64xf32>
    %10 = vector.extract_strided_slice %0 {offsets = [0, 1, 0], sizes = [2, 15, 64], strides = [1, 1, 1]} : vector<2x16x64xf32> to vector<2x15x64xf32>
    %11 = tpu.concatenate %10, %7 in 1 : vector<2x15x64xf32>, vector<2x1x64xf32> -> vector<2x16x64xf32>
    %12 = tpu.concatenate %9, %0, %11 in 2 : vector<2x16x64xf32>, vector<2x16x64xf32>, vector<2x16x64xf32> -> vector<2x16x192xf32>
    %13 = vector.shape_cast %12 : vector<2x16x192xf32> to vector<32x192xf32>
    %cst_14 = arith.constant dense<0.000000e+00> : vector<32x64xf32>
    %14 = tpu.matmul %13, %4, %cst_14 {dimension_numbers = #tpu.dot_dimension_numbers<[1], [0], [0], [1], [0, 0, 1, 1], [], []>} : vector<32x192xf32>, vector<192x64xf32>, vector<32x64xf32> -> vector<32x64xf32>
    %15 = vector.shape_cast %14 : vector<32x64xf32> to vector<2x16x64xf32>
    %16 = vector.shape_cast %6 : vector<1x64xf32> to vector<1x1x64xf32>
    %17 = vector.broadcast %16 : vector<1x1x64xf32> to vector<2x16x64xf32>
    %18 = arith.addf %15, %17 : vector<2x16x64xf32>
    %c0_15 = arith.constant 0 : index
    %c0_16 = arith.constant 0 : index
    %c0_17 = arith.constant 0 : index
    %c0_18 = arith.constant 0 : index
    %19 = vector.load %arg3[%c0_15, %c0_16, %c0_17, %c0_18] : memref<2x2x2x64xf32, #tpu.memory_space<vmem>>, vector<1x1x2x64xf32>
    %20 = vector.shape_cast %19 : vector<1x1x2x64xf32> to vector<2x64xf32>
    %c0_19 = arith.constant 0 : index
    %c0_20 = arith.constant 0 : index
    %c0_21 = arith.constant 0 : index
    %c0_22 = arith.constant 0 : index
    %21 = vector.load %arg4[%c0_19, %c0_20, %c0_21, %c0_22] : memref<2x2x2x64xf32, #tpu.memory_space<vmem>>, vector<1x1x2x64xf32>
    %22 = vector.shape_cast %21 : vector<1x1x2x64xf32> to vector<2x64xf32>
    %cst_23 = arith.constant dense<0.000000e+00> : vector<2x64xf32>
    %23 = vector.multi_reduction <add>, %18, %cst_23 [1] : vector<2x16x64xf32> to vector<2x64xf32>
    %cst_24 = arith.constant dense<0.000000e+00> : vector<2x4xf32>
    %24 = tpu.matmul %23, %1, %cst_24 {dimension_numbers = #tpu.dot_dimension_numbers<[1], [0], [0], [1], [0, 0, 1, 1], [], []>} : vector<2x64xf32>, vector<64x4xf32>, vector<2x4xf32> -> vector<2x4xf32>
    %cst_25 = arith.constant dense<0.000000e+00> : vector<2x64xf32>
    %25 = tpu.matmul %24, %2, %cst_25 {dimension_numbers = #tpu.dot_dimension_numbers<[1], [0], [0], [1], [0, 0, 1, 1], [], []>} : vector<2x4xf32>, vector<4x64xf32>, vector<2x64xf32> -> vector<2x64xf32>
    %26 = vector.shape_cast %25 : vector<2x64xf32> to vector<2x1x64xf32>
    %27 = vector.broadcast %26 : vector<2x1x64xf32> to vector<2x16x64xf32>
    %28 = arith.subf %18, %27 : vector<2x16x64xf32>
    %29 = arith.mulf %28, %28 : vector<2x16x64xf32>
    %cst_26 = arith.constant dense<0.000000e+00> : vector<2x64xf32>
    %30 = vector.multi_reduction <add>, %29, %cst_26 [1] : vector<2x16x64xf32> to vector<2x64xf32>
    %cst_27 = arith.constant dense<0.000000e+00> : vector<2x4xf32>
    %31 = tpu.matmul %30, %1, %cst_27 {dimension_numbers = #tpu.dot_dimension_numbers<[1], [0], [0], [1], [0, 0, 1, 1], [], []>} : vector<2x64xf32>, vector<64x4xf32>, vector<2x4xf32> -> vector<2x4xf32>
    %cst_28 = arith.constant 9.99999974E-6 : f32
    %32 = vector.broadcast %cst_28 : f32 to vector<2x4xf32>
    %33 = arith.addf %31, %32 : vector<2x4xf32>
    %34 = math.rsqrt %33 : vector<2x4xf32>
    %cst_29 = arith.constant dense<0.000000e+00> : vector<2x64xf32>
    %35 = tpu.matmul %34, %2, %cst_29 {dimension_numbers = #tpu.dot_dimension_numbers<[1], [0], [0], [1], [0, 0, 1, 1], [], []>} : vector<2x4xf32>, vector<4x64xf32>, vector<2x64xf32> -> vector<2x64xf32>
    %36 = vector.shape_cast %35 : vector<2x64xf32> to vector<2x1x64xf32>
    %37 = vector.broadcast %36 : vector<2x1x64xf32> to vector<2x16x64xf32>
    %38 = arith.mulf %28, %37 : vector<2x16x64xf32>
    %39 = vector.shape_cast %20 : vector<2x64xf32> to vector<2x1x64xf32>
    %40 = vector.broadcast %39 : vector<2x1x64xf32> to vector<2x16x64xf32>
    %41 = arith.mulf %38, %40 : vector<2x16x64xf32>
    %42 = vector.shape_cast %22 : vector<2x64xf32> to vector<2x1x64xf32>
    %43 = vector.broadcast %42 : vector<2x1x64xf32> to vector<2x16x64xf32>
    %44 = arith.addf %41, %43 : vector<2x16x64xf32>
    %cst_30 = arith.constant 0.000000e+00 : f32
    %45 = vector.broadcast %cst_30 : f32 to vector<2x16x64xf32>
    %46 = arith.maximumf %44, %45 : vector<2x16x64xf32>
    %c0_31 = arith.constant 0 : index
    %c1 = arith.constant 1 : index
    %c0_32 = arith.constant 0 : index
    %c0_33 = arith.constant 0 : index
    %47 = vector.load %arg1[%c0_31, %c1, %c0_32, %c0_33] : memref<2x2x192x64xf32, #tpu.memory_space<vmem>>, vector<1x1x192x64xf32>
    %48 = vector.shape_cast %47 : vector<1x1x192x64xf32> to vector<192x64xf32>
    %c0_34 = arith.constant 0 : index
    %c1_35 = arith.constant 1 : index
    %c0_36 = arith.constant 0 : index
    %c0_37 = arith.constant 0 : index
    %49 = vector.load %arg2[%c0_34, %c1_35, %c0_36, %c0_37] : memref<2x2x1x64xf32, #tpu.memory_space<vmem>>, vector<1x1x1x64xf32>
    %50 = vector.shape_cast %49 : vector<1x1x1x64xf32> to vector<1x64xf32>
    %cst_38 = arith.constant 0.000000e+00 : f32
    %51 = vector.broadcast %cst_38 : f32 to vector<2x1x64xf32>
    %52 = vector.extract_strided_slice %46 {offsets = [0, 0, 0], sizes = [2, 15, 64], strides = [1, 1, 1]} : vector<2x16x64xf32> to vector<2x15x64xf32>
    %53 = tpu.concatenate %51, %52 in 1 : vector<2x1x64xf32>, vector<2x15x64xf32> -> vector<2x16x64xf32>
    %54 = vector.extract_strided_slice %46 {offsets = [0, 1, 0], sizes = [2, 15, 64], strides = [1, 1, 1]} : vector<2x16x64xf32> to vector<2x15x64xf32>
    %55 = tpu.concatenate %54, %51 in 1 : vector<2x15x64xf32>, vector<2x1x64xf32> -> vector<2x16x64xf32>
    %56 = tpu.concatenate %53, %46, %55 in 2 : vector<2x16x64xf32>, vector<2x16x64xf32>, vector<2x16x64xf32> -> vector<2x16x192xf32>
    %57 = vector.shape_cast %56 : vector<2x16x192xf32> to vector<32x192xf32>
    %cst_39 = arith.constant dense<0.000000e+00> : vector<32x64xf32>
    %58 = tpu.matmul %57, %48, %cst_39 {dimension_numbers = #tpu.dot_dimension_numbers<[1], [0], [0], [1], [0, 0, 1, 1], [], []>} : vector<32x192xf32>, vector<192x64xf32>, vector<32x64xf32> -> vector<32x64xf32>
    %59 = vector.shape_cast %58 : vector<32x64xf32> to vector<2x16x64xf32>
    %60 = vector.shape_cast %50 : vector<1x64xf32> to vector<1x1x64xf32>
    %61 = vector.broadcast %60 : vector<1x1x64xf32> to vector<2x16x64xf32>
    %62 = arith.addf %59, %61 : vector<2x16x64xf32>
    %c0_40 = arith.constant 0 : index
    %c1_41 = arith.constant 1 : index
    %c0_42 = arith.constant 0 : index
    %c0_43 = arith.constant 0 : index
    %63 = vector.load %arg3[%c0_40, %c1_41, %c0_42, %c0_43] : memref<2x2x2x64xf32, #tpu.memory_space<vmem>>, vector<1x1x2x64xf32>
    %64 = vector.shape_cast %63 : vector<1x1x2x64xf32> to vector<2x64xf32>
    %c0_44 = arith.constant 0 : index
    %c1_45 = arith.constant 1 : index
    %c0_46 = arith.constant 0 : index
    %c0_47 = arith.constant 0 : index
    %65 = vector.load %arg4[%c0_44, %c1_45, %c0_46, %c0_47] : memref<2x2x2x64xf32, #tpu.memory_space<vmem>>, vector<1x1x2x64xf32>
    %66 = vector.shape_cast %65 : vector<1x1x2x64xf32> to vector<2x64xf32>
    %cst_48 = arith.constant dense<0.000000e+00> : vector<2x64xf32>
    %67 = vector.multi_reduction <add>, %62, %cst_48 [1] : vector<2x16x64xf32> to vector<2x64xf32>
    %cst_49 = arith.constant dense<0.000000e+00> : vector<2x4xf32>
    %68 = tpu.matmul %67, %1, %cst_49 {dimension_numbers = #tpu.dot_dimension_numbers<[1], [0], [0], [1], [0, 0, 1, 1], [], []>} : vector<2x64xf32>, vector<64x4xf32>, vector<2x4xf32> -> vector<2x4xf32>
    %cst_50 = arith.constant dense<0.000000e+00> : vector<2x64xf32>
    %69 = tpu.matmul %68, %2, %cst_50 {dimension_numbers = #tpu.dot_dimension_numbers<[1], [0], [0], [1], [0, 0, 1, 1], [], []>} : vector<2x4xf32>, vector<4x64xf32>, vector<2x64xf32> -> vector<2x64xf32>
    %70 = vector.shape_cast %69 : vector<2x64xf32> to vector<2x1x64xf32>
    %71 = vector.broadcast %70 : vector<2x1x64xf32> to vector<2x16x64xf32>
    %72 = arith.subf %62, %71 : vector<2x16x64xf32>
    %73 = arith.mulf %72, %72 : vector<2x16x64xf32>
    %cst_51 = arith.constant dense<0.000000e+00> : vector<2x64xf32>
    %74 = vector.multi_reduction <add>, %73, %cst_51 [1] : vector<2x16x64xf32> to vector<2x64xf32>
    %cst_52 = arith.constant dense<0.000000e+00> : vector<2x4xf32>
    %75 = tpu.matmul %74, %1, %cst_52 {dimension_numbers = #tpu.dot_dimension_numbers<[1], [0], [0], [1], [0, 0, 1, 1], [], []>} : vector<2x64xf32>, vector<64x4xf32>, vector<2x4xf32> -> vector<2x4xf32>
    %cst_53 = arith.constant 9.99999974E-6 : f32
    %76 = vector.broadcast %cst_53 : f32 to vector<2x4xf32>
    %77 = arith.addf %75, %76 : vector<2x4xf32>
    %78 = math.rsqrt %77 : vector<2x4xf32>
    %cst_54 = arith.constant dense<0.000000e+00> : vector<2x64xf32>
    %79 = tpu.matmul %78, %2, %cst_54 {dimension_numbers = #tpu.dot_dimension_numbers<[1], [0], [0], [1], [0, 0, 1, 1], [], []>} : vector<2x4xf32>, vector<4x64xf32>, vector<2x64xf32> -> vector<2x64xf32>
    %80 = vector.shape_cast %79 : vector<2x64xf32> to vector<2x1x64xf32>
    %81 = vector.broadcast %80 : vector<2x1x64xf32> to vector<2x16x64xf32>
    %82 = arith.mulf %72, %81 : vector<2x16x64xf32>
    %83 = vector.shape_cast %64 : vector<2x64xf32> to vector<2x1x64xf32>
    %84 = vector.broadcast %83 : vector<2x1x64xf32> to vector<2x16x64xf32>
    %85 = arith.mulf %82, %84 : vector<2x16x64xf32>
    %86 = vector.shape_cast %66 : vector<2x64xf32> to vector<2x1x64xf32>
    %87 = vector.broadcast %86 : vector<2x1x64xf32> to vector<2x16x64xf32>
    %88 = arith.addf %85, %87 : vector<2x16x64xf32>
    %89 = arith.addf %0, %88 : vector<2x16x64xf32>
    %c1_55 = arith.constant 1 : index
    %c0_56 = arith.constant 0 : index
    %c0_57 = arith.constant 0 : index
    %c0_58 = arith.constant 0 : index
    %90 = vector.load %arg1[%c1_55, %c0_56, %c0_57, %c0_58] : memref<2x2x192x64xf32, #tpu.memory_space<vmem>>, vector<1x1x192x64xf32>
    %91 = vector.shape_cast %90 : vector<1x1x192x64xf32> to vector<192x64xf32>
    %c1_59 = arith.constant 1 : index
    %c0_60 = arith.constant 0 : index
    %c0_61 = arith.constant 0 : index
    %c0_62 = arith.constant 0 : index
    %92 = vector.load %arg2[%c1_59, %c0_60, %c0_61, %c0_62] : memref<2x2x1x64xf32, #tpu.memory_space<vmem>>, vector<1x1x1x64xf32>
    %93 = vector.shape_cast %92 : vector<1x1x1x64xf32> to vector<1x64xf32>
    %cst_63 = arith.constant 0.000000e+00 : f32
    %94 = vector.broadcast %cst_63 : f32 to vector<2x1x64xf32>
    %95 = vector.extract_strided_slice %89 {offsets = [0, 0, 0], sizes = [2, 15, 64], strides = [1, 1, 1]} : vector<2x16x64xf32> to vector<2x15x64xf32>
    %96 = tpu.concatenate %94, %95 in 1 : vector<2x1x64xf32>, vector<2x15x64xf32> -> vector<2x16x64xf32>
    %97 = vector.extract_strided_slice %89 {offsets = [0, 1, 0], sizes = [2, 15, 64], strides = [1, 1, 1]} : vector<2x16x64xf32> to vector<2x15x64xf32>
    %98 = tpu.concatenate %97, %94 in 1 : vector<2x15x64xf32>, vector<2x1x64xf32> -> vector<2x16x64xf32>
    %99 = tpu.concatenate %96, %89, %98 in 2 : vector<2x16x64xf32>, vector<2x16x64xf32>, vector<2x16x64xf32> -> vector<2x16x192xf32>
    %100 = vector.shape_cast %99 : vector<2x16x192xf32> to vector<32x192xf32>
    %cst_64 = arith.constant dense<0.000000e+00> : vector<32x64xf32>
    %101 = tpu.matmul %100, %91, %cst_64 {dimension_numbers = #tpu.dot_dimension_numbers<[1], [0], [0], [1], [0, 0, 1, 1], [], []>} : vector<32x192xf32>, vector<192x64xf32>, vector<32x64xf32> -> vector<32x64xf32>
    %102 = vector.shape_cast %101 : vector<32x64xf32> to vector<2x16x64xf32>
    %103 = vector.shape_cast %93 : vector<1x64xf32> to vector<1x1x64xf32>
    %104 = vector.broadcast %103 : vector<1x1x64xf32> to vector<2x16x64xf32>
    %105 = arith.addf %102, %104 : vector<2x16x64xf32>
    %c1_65 = arith.constant 1 : index
    %c0_66 = arith.constant 0 : index
    %c0_67 = arith.constant 0 : index
    %c0_68 = arith.constant 0 : index
    %106 = vector.load %arg3[%c1_65, %c0_66, %c0_67, %c0_68] : memref<2x2x2x64xf32, #tpu.memory_space<vmem>>, vector<1x1x2x64xf32>
    %107 = vector.shape_cast %106 : vector<1x1x2x64xf32> to vector<2x64xf32>
    %c1_69 = arith.constant 1 : index
    %c0_70 = arith.constant 0 : index
    %c0_71 = arith.constant 0 : index
    %c0_72 = arith.constant 0 : index
    %108 = vector.load %arg4[%c1_69, %c0_70, %c0_71, %c0_72] : memref<2x2x2x64xf32, #tpu.memory_space<vmem>>, vector<1x1x2x64xf32>
    %109 = vector.shape_cast %108 : vector<1x1x2x64xf32> to vector<2x64xf32>
    %cst_73 = arith.constant dense<0.000000e+00> : vector<2x64xf32>
    %110 = vector.multi_reduction <add>, %105, %cst_73 [1] : vector<2x16x64xf32> to vector<2x64xf32>
    %cst_74 = arith.constant dense<0.000000e+00> : vector<2x4xf32>
    %111 = tpu.matmul %110, %1, %cst_74 {dimension_numbers = #tpu.dot_dimension_numbers<[1], [0], [0], [1], [0, 0, 1, 1], [], []>} : vector<2x64xf32>, vector<64x4xf32>, vector<2x4xf32> -> vector<2x4xf32>
    %cst_75 = arith.constant dense<0.000000e+00> : vector<2x64xf32>
    %112 = tpu.matmul %111, %2, %cst_75 {dimension_numbers = #tpu.dot_dimension_numbers<[1], [0], [0], [1], [0, 0, 1, 1], [], []>} : vector<2x4xf32>, vector<4x64xf32>, vector<2x64xf32> -> vector<2x64xf32>
    %113 = vector.shape_cast %112 : vector<2x64xf32> to vector<2x1x64xf32>
    %114 = vector.broadcast %113 : vector<2x1x64xf32> to vector<2x16x64xf32>
    %115 = arith.subf %105, %114 : vector<2x16x64xf32>
    %116 = arith.mulf %115, %115 : vector<2x16x64xf32>
    %cst_76 = arith.constant dense<0.000000e+00> : vector<2x64xf32>
    %117 = vector.multi_reduction <add>, %116, %cst_76 [1] : vector<2x16x64xf32> to vector<2x64xf32>
    %cst_77 = arith.constant dense<0.000000e+00> : vector<2x4xf32>
    %118 = tpu.matmul %117, %1, %cst_77 {dimension_numbers = #tpu.dot_dimension_numbers<[1], [0], [0], [1], [0, 0, 1, 1], [], []>} : vector<2x64xf32>, vector<64x4xf32>, vector<2x4xf32> -> vector<2x4xf32>
    %cst_78 = arith.constant 9.99999974E-6 : f32
    %119 = vector.broadcast %cst_78 : f32 to vector<2x4xf32>
    %120 = arith.addf %118, %119 : vector<2x4xf32>
    %121 = math.rsqrt %120 : vector<2x4xf32>
    %cst_79 = arith.constant dense<0.000000e+00> : vector<2x64xf32>
    %122 = tpu.matmul %121, %2, %cst_79 {dimension_numbers = #tpu.dot_dimension_numbers<[1], [0], [0], [1], [0, 0, 1, 1], [], []>} : vector<2x4xf32>, vector<4x64xf32>, vector<2x64xf32> -> vector<2x64xf32>
    %123 = vector.shape_cast %122 : vector<2x64xf32> to vector<2x1x64xf32>
    %124 = vector.broadcast %123 : vector<2x1x64xf32> to vector<2x16x64xf32>
    %125 = arith.mulf %115, %124 : vector<2x16x64xf32>
    %126 = vector.shape_cast %107 : vector<2x64xf32> to vector<2x1x64xf32>
    %127 = vector.broadcast %126 : vector<2x1x64xf32> to vector<2x16x64xf32>
    %128 = arith.mulf %125, %127 : vector<2x16x64xf32>
    %129 = vector.shape_cast %109 : vector<2x64xf32> to vector<2x1x64xf32>
    %130 = vector.broadcast %129 : vector<2x1x64xf32> to vector<2x16x64xf32>
    %131 = arith.addf %128, %130 : vector<2x16x64xf32>
    %cst_80 = arith.constant 0.000000e+00 : f32
    %132 = vector.broadcast %cst_80 : f32 to vector<2x16x64xf32>
    %133 = arith.maximumf %131, %132 : vector<2x16x64xf32>
    %c1_81 = arith.constant 1 : index
    %c1_82 = arith.constant 1 : index
    %c0_83 = arith.constant 0 : index
    %c0_84 = arith.constant 0 : index
    %134 = vector.load %arg1[%c1_81, %c1_82, %c0_83, %c0_84] : memref<2x2x192x64xf32, #tpu.memory_space<vmem>>, vector<1x1x192x64xf32>
    %135 = vector.shape_cast %134 : vector<1x1x192x64xf32> to vector<192x64xf32>
    %c1_85 = arith.constant 1 : index
    %c1_86 = arith.constant 1 : index
    %c0_87 = arith.constant 0 : index
    %c0_88 = arith.constant 0 : index
    %136 = vector.load %arg2[%c1_85, %c1_86, %c0_87, %c0_88] : memref<2x2x1x64xf32, #tpu.memory_space<vmem>>, vector<1x1x1x64xf32>
    %137 = vector.shape_cast %136 : vector<1x1x1x64xf32> to vector<1x64xf32>
    %cst_89 = arith.constant 0.000000e+00 : f32
    %138 = vector.broadcast %cst_89 : f32 to vector<2x1x64xf32>
    %139 = vector.extract_strided_slice %133 {offsets = [0, 0, 0], sizes = [2, 15, 64], strides = [1, 1, 1]} : vector<2x16x64xf32> to vector<2x15x64xf32>
    %140 = tpu.concatenate %138, %139 in 1 : vector<2x1x64xf32>, vector<2x15x64xf32> -> vector<2x16x64xf32>
    %141 = vector.extract_strided_slice %133 {offsets = [0, 1, 0], sizes = [2, 15, 64], strides = [1, 1, 1]} : vector<2x16x64xf32> to vector<2x15x64xf32>
    %142 = tpu.concatenate %141, %138 in 1 : vector<2x15x64xf32>, vector<2x1x64xf32> -> vector<2x16x64xf32>
    %143 = tpu.concatenate %140, %133, %142 in 2 : vector<2x16x64xf32>, vector<2x16x64xf32>, vector<2x16x64xf32> -> vector<2x16x192xf32>
    %144 = vector.shape_cast %143 : vector<2x16x192xf32> to vector<32x192xf32>
    %cst_90 = arith.constant dense<0.000000e+00> : vector<32x64xf32>
    %145 = tpu.matmul %144, %135, %cst_90 {dimension_numbers = #tpu.dot_dimension_numbers<[1], [0], [0], [1], [0, 0, 1, 1], [], []>} : vector<32x192xf32>, vector<192x64xf32>, vector<32x64xf32> -> vector<32x64xf32>
    %146 = vector.shape_cast %145 : vector<32x64xf32> to vector<2x16x64xf32>
    %147 = vector.shape_cast %137 : vector<1x64xf32> to vector<1x1x64xf32>
    %148 = vector.broadcast %147 : vector<1x1x64xf32> to vector<2x16x64xf32>
    %149 = arith.addf %146, %148 : vector<2x16x64xf32>
    %c1_91 = arith.constant 1 : index
    %c1_92 = arith.constant 1 : index
    %c0_93 = arith.constant 0 : index
    %c0_94 = arith.constant 0 : index
    %150 = vector.load %arg3[%c1_91, %c1_92, %c0_93, %c0_94] : memref<2x2x2x64xf32, #tpu.memory_space<vmem>>, vector<1x1x2x64xf32>
    %151 = vector.shape_cast %150 : vector<1x1x2x64xf32> to vector<2x64xf32>
    %c1_95 = arith.constant 1 : index
    %c1_96 = arith.constant 1 : index
    %c0_97 = arith.constant 0 : index
    %c0_98 = arith.constant 0 : index
    %152 = vector.load %arg4[%c1_95, %c1_96, %c0_97, %c0_98] : memref<2x2x2x64xf32, #tpu.memory_space<vmem>>, vector<1x1x2x64xf32>
    %153 = vector.shape_cast %152 : vector<1x1x2x64xf32> to vector<2x64xf32>
    %cst_99 = arith.constant dense<0.000000e+00> : vector<2x64xf32>
    %154 = vector.multi_reduction <add>, %149, %cst_99 [1] : vector<2x16x64xf32> to vector<2x64xf32>
    %cst_100 = arith.constant dense<0.000000e+00> : vector<2x4xf32>
    %155 = tpu.matmul %154, %1, %cst_100 {dimension_numbers = #tpu.dot_dimension_numbers<[1], [0], [0], [1], [0, 0, 1, 1], [], []>} : vector<2x64xf32>, vector<64x4xf32>, vector<2x4xf32> -> vector<2x4xf32>
    %cst_101 = arith.constant dense<0.000000e+00> : vector<2x64xf32>
    %156 = tpu.matmul %155, %2, %cst_101 {dimension_numbers = #tpu.dot_dimension_numbers<[1], [0], [0], [1], [0, 0, 1, 1], [], []>} : vector<2x4xf32>, vector<4x64xf32>, vector<2x64xf32> -> vector<2x64xf32>
    %157 = vector.shape_cast %156 : vector<2x64xf32> to vector<2x1x64xf32>
    %158 = vector.broadcast %157 : vector<2x1x64xf32> to vector<2x16x64xf32>
    %159 = arith.subf %149, %158 : vector<2x16x64xf32>
    %160 = arith.mulf %159, %159 : vector<2x16x64xf32>
    %cst_102 = arith.constant dense<0.000000e+00> : vector<2x64xf32>
    %161 = vector.multi_reduction <add>, %160, %cst_102 [1] : vector<2x16x64xf32> to vector<2x64xf32>
    %cst_103 = arith.constant dense<0.000000e+00> : vector<2x4xf32>
    %162 = tpu.matmul %161, %1, %cst_103 {dimension_numbers = #tpu.dot_dimension_numbers<[1], [0], [0], [1], [0, 0, 1, 1], [], []>} : vector<2x64xf32>, vector<64x4xf32>, vector<2x4xf32> -> vector<2x4xf32>
    %cst_104 = arith.constant 9.99999974E-6 : f32
    %163 = vector.broadcast %cst_104 : f32 to vector<2x4xf32>
    %164 = arith.addf %162, %163 : vector<2x4xf32>
    %165 = math.rsqrt %164 : vector<2x4xf32>
    %cst_105 = arith.constant dense<0.000000e+00> : vector<2x64xf32>
    %166 = tpu.matmul %165, %2, %cst_105 {dimension_numbers = #tpu.dot_dimension_numbers<[1], [0], [0], [1], [0, 0, 1, 1], [], []>} : vector<2x4xf32>, vector<4x64xf32>, vector<2x64xf32> -> vector<2x64xf32>
    %167 = vector.shape_cast %166 : vector<2x64xf32> to vector<2x1x64xf32>
    %168 = vector.broadcast %167 : vector<2x1x64xf32> to vector<2x16x64xf32>
    %169 = arith.mulf %159, %168 : vector<2x16x64xf32>
    %170 = vector.shape_cast %151 : vector<2x64xf32> to vector<2x1x64xf32>
    %171 = vector.broadcast %170 : vector<2x1x64xf32> to vector<2x16x64xf32>
    %172 = arith.mulf %169, %171 : vector<2x16x64xf32>
    %173 = vector.shape_cast %153 : vector<2x64xf32> to vector<2x1x64xf32>
    %174 = vector.broadcast %173 : vector<2x1x64xf32> to vector<2x16x64xf32>
    %175 = arith.addf %172, %174 : vector<2x16x64xf32>
    %176 = arith.addf %89, %175 : vector<2x16x64xf32>
    %c0_106 = arith.constant 0 : index
    %c0_107 = arith.constant 0 : index
    %c0_108 = arith.constant 0 : index
    %177 = vector.load %arg7[%c0_106, %c0_107, %c0_108] : memref<2x16x64xf32, #tpu.memory_space<vmem>>, vector<2x16x64xf32>
    tpu.vector_store %arg7[%c0_106, %c0_107, %c0_108], %176 {strides = array<i32>} : memref<2x16x64xf32, #tpu.memory_space<vmem>>, vector<2x16x64xf32>,
    return
  }
}

</mosaic_0001>

<bundles_post_ra>
// kernel: tile.98
= control target key start
LH: loop header
LB: loop body
LE: loop exit
PB: predicated region body
PF: predicated region fallthrough
CT: control target
= control target key end

     0   :  { %s28_s0 = inlined_call_operand.vmem [shape: f32[4], index: 0, kind: input, shape index: {}]   ;;  %s29_s1 = inlined_call_operand.vmem [shape: f32[16,4], index: 1, kind: output, shape index: {}]  }
   0x1   :  { %v4_v0 = vld [vmem:[%s28_s0] ss:$0 sm:$0xff] }
   0x2   :  { %5 = vst [vmem:[%s29_s1] sm:$0xff] %v4_v0  ;;  %8 = vst [vmem:[%s29_s1 + $0x8] sm:$0xff] %v4_v0 }

// kernel: tile.103
= control target key start
LH: loop header
LB: loop body
LE: loop exit
PB: predicated region body
PF: predicated region fallthrough
CT: control target
= control target key end

     0   :  { %s131_s10 = smov 60   ;;  %s132_s11 = smov 52   ;;  %vm3_vm0 = vcmask 31744   ;;  %vm9_vm1 = vcmask 523744   ;;  %vm15_vm2 = vcmask 490944   ;;  %vm21_vm3 = vcmask 458144   ;;  %s207_s0 = inlined_call_operand.vmem [shape: f32[16,4], index: 0, kind: input, shape index: {}]   ;;  %s208_s1 = inlined_call_operand.vmem [shape: f32[1,1,64], index: 1, kind: output, shape index: {}]  }
   0x1   :  { %v101_v0 = vld [vmem:[%s207_s0 + $0xf] sm:$0x1]   ;;  %v103_v1 = vld [vmem:[%s207_s0 + $0xd] sm:$0x1]   ;;  %v102_v2 = vld [vmem:[%s207_s0 + $0xe] sm:$0x1]  }
   0x2   :  { %7 = vrot.lane.b32.xlu0 %v101_v0, %s131_s10  ;;  %19 = vrot.lane.b32.xlu1 %v103_v1, %s132_s11  ;;  %v104_v3 = vld [vmem:[%s207_s0 + $0xc] sm:$0x1]   ;;  %s133_s16 = smov 56   ;;  %s134_s17 = smov 48   ;;  %v105_v4 = vld [vmem:[%s207_s0 + $0xb] sm:$0x1]  }
   0x3   :  { %v106_v5 = vld [vmem:[%s207_s0 + $0xa] sm:$0x1]   ;;  %v2_v6 = vld [vmem:[%s207_s0] sm:$0x1]   ;;  %s135_s24 = smov 44   ;;  %s136_s25 = smov 40  }
   0x4   :  { %4 = vst.msk [vmem:[#allocation0] sm:$0x1] %vm3_vm0, %v2_v6   ;;  %v107_v7 = vld [vmem:[%s207_s0 + $0x9] sm:$0x1]   ;;  %v108_v8 = vld [vmem:[%s207_s0 + $0x8] sm:$0x1]  }
   0x5   :  { %s137_s30 = smov 36   ;;  %s138_s2 = smov 32   ;;  %v109_v9 = vld [vmem:[%s207_s0 + $0x7] sm:$0x1]   ;;  %v110_v10 = vld [vmem:[%s207_s0 + $0x6] sm:$0x1]  }
   0x6   :  { %13 = vrot.lane.b32.xlu0 %v102_v2, %s133_s16  ;;  %25 = vrot.lane.b32.xlu1 %v104_v3, %s134_s17  ;;  %s139_s7 = smov 28   ;;  %s140_s8 = smov 24   ;;  %v111_v11 = vld [vmem:[%s207_s0 + $0x5] sm:$0x1]   ;;  %v112_v12 = vld [vmem:[%s207_s0 + $0x4] sm:$0x1]  }
   0x7   :  { %s141_s13 = smov 20   ;;  %s142_s14 = smov 16   ;;  %v113_v13 = vld [vmem:[%s207_s0 + $0x3] sm:$0x1]   ;;  %v114_v14 = vld [vmem:[%s207_s0 + $0x2] sm:$0x1]  }
   0x8   :  { %s143_s19 = smov 12   ;;  %s144_s20 = smov 8   ;;  %v115_v15 = vld [vmem:[%s207_s0 + $0x1] sm:$0x1]   ;;  %vm27_vm4 = vcmask 425344   ;;  %vm33_vm5 = vcmask 392544  }
   0x9   :  { %s145_s0 = smov 4   ;;  %vm39_vm6 = vcmask 359744   ;;  %vm45_vm7 = vcmask 326944   ;;  %vm51_vm8 = vcmask 294144   ;;  %vm57_vm9 = vcmask 261344  }
   0xa   :  { %31 = vrot.lane.b32.xlu0 %v105_v4, %s135_s24  ;;  %37 = vrot.lane.b32.xlu1 %v106_v5, %s136_s25  ;;  %vm63_vm10 = vcmask 228544   ;;  %vm69_vm11 = vcmask 195744   ;;  %vm75_vm12 = vcmask 162944   ;;  %vm81_vm13 = vcmask 130144  }
   0xb   :  { %vm87_vm14 = vcmask 97344   ;;  %vm93_vm15 = vcmask 64544  }
   0xe   :  { %43 = vrot.lane.b32.xlu0 %v107_v7, %s137_s30  ;;  %49 = vrot.lane.b32.xlu1 %v108_v8, %s138_s2 }
  0x12   :  { %55 = vrot.lane.b32.xlu0 %v109_v9, %s139_s7  ;;  %61 = vrot.lane.b32.xlu1 %v110_v10, %s140_s8 }
  0x16   :  { %67 = vrot.lane.b32.xlu0 %v111_v11, %s141_s13  ;;  %73 = vrot.lane.b32.xlu1 %v112_v12, %s142_s14 }
  0x1a   :  { %79 = vrot.lane.b32.xlu0 %v113_v13, %s143_s19  ;;  %85 = vrot.lane.b32.xlu1 %v114_v14, %s144_s20 }
  0x1e   :  { %91 = vrot.lane.b32.xlu0 %v115_v15, %s145_s0 }
  0x74   :  { %v8_v16 = vpop.permute.xlu0 %7   ;;  %v20_v17 = vpop.permute.xlu1 %19  }
  0x75   :  { %10 = vst.msk [vmem:[#allocation0] sm:$0x1] %vm9_vm1, %v8_v16  }
  0x78   :  { %v14_v18 = vpop.permute.xlu0 %13   ;;  %v26_v19 = vpop.permute.xlu1 %25  }
  0x79   :  { %16 = vst.msk [vmem:[#allocation0] sm:$0x1] %vm15_vm2, %v14_v18  }
  0x7a   :  { %22 = vst.msk [vmem:[#allocation0] sm:$0x1] %vm21_vm3, %v20_v17  }
  0x7b   :  { %28 = vst.msk [vmem:[#allocation0] sm:$0x1] %vm27_vm4, %v26_v19  }
  0x7c   :  { %v32_v20 = vpop.permute.xlu0 %31   ;;  %v38_v21 = vpop.permute.xlu1 %37  }
  0x7d   :  { %34 = vst.msk [vmem:[#allocation0] sm:$0x1] %vm33_vm5, %v32_v20  }
  0x7e   :  { %40 = vst.msk [vmem:[#allocation0] sm:$0x1] %vm39_vm6, %v38_v21  }
  0x80   :  { %v44_v22 = vpop.permute.xlu0 %43   ;;  %v50_v23 = vpop.permute.xlu1 %49  }
  0x81   :  { %46 = vst.msk [vmem:[#allocation0] sm:$0x1] %vm45_vm7, %v44_v22  }
  0x82   :  { %52 = vst.msk [vmem:[#allocation0] sm:$0x1] %vm51_vm8, %v50_v23  }
  0x84   :  { %v56_v24 = vpop.permute.xlu0 %55   ;;  %v62_v25 = vpop.permute.xlu1 %61  }
  0x85   :  { %58 = vst.msk [vmem:[#allocation0] sm:$0x1] %vm57_vm9, %v56_v24  }
  0x86   :  { %64 = vst.msk [vmem:[#allocation0] sm:$0x1] %vm63_vm10, %v62_v25  }
  0x88   :  { %v68_v26 = vpop.permute.xlu0 %67   ;;  %v74_v27 = vpop.permute.xlu1 %73  }
  0x89   :  { %70 = vst.msk [vmem:[#allocation0] sm:$0x1] %vm69_vm11, %v68_v26  }
  0x8a   :  { %76 = vst.msk [vmem:[#allocation0] sm:$0x1] %vm75_vm12, %v74_v27  }
  0x8c   :  { %v80_v28 = vpop.permute.xlu0 %79   ;;  %v86_v29 = vpop.permute.xlu1 %85  }
  0x8d   :  { %82 = vst.msk [vmem:[#allocation0] sm:$0x1] %vm81_vm13, %v80_v28  }
  0x8e   :  { %88 = vst.msk [vmem:[#allocation0] sm:$0x1] %vm87_vm14, %v86_v29  }
  0x90   :  { %v92_v30 = vpop.permute.xlu0 %91  }
  0x91   :  { %94 = vst.msk [vmem:[#allocation0] sm:$0x1] %vm93_vm15, %v92_v30  }
  0x98   :  { %v98_v31 = vld [vmem:[#allocation0] sm:$0x1] }
  0x99   :  { %100 = vst [vmem:[%s208_s1] sm:$0x1] %v98_v31 }

// kernel: tile.129
= control target key start
LH: loop header
LB: loop body
LE: loop exit
PB: predicated region body
PF: predicated region fallthrough
CT: control target
= control target key end

     0   :  { %vm6_vm0 = vcmask 1043458   ;;  %s11_s6 = smov 3  ;;  %s14_s7 = smov 12  ;;  %vm8_vm1 = vcmask 31744   ;;  %vm20_vm2 = vcmask 523744   ;;  %vm32_vm3 = vcmask 490944   ;;  %s381_s0 = inlined_call_operand.vmem [shape: f32[4,16,4], index: 0, kind: input, shape index: {}]   ;;  %s382_s1 = inlined_call_operand.vmem [shape: f32[4,64], index: 1, kind: output, shape index: {}]  }
   0x1   :  { %v196_v0 = vld [vmem:[%s381_s0 + $0xf] ss:$16 sm:%s11_s6]   ;;  %s35_s12 = smov 3  ;;  %s38_s15 = smov 12  ;;  %vm44_vm4 = vcmask 458144   ;;  %vm56_vm5 = vcmask 425344  }
   0x2   :  { %v197_v1 = vld [vmem:[%s381_s0 + $0xf] ss:$16 sm:%s14_s7]   ;;  %v200_v3 = vld [vmem:[%s381_s0 + $0xd] ss:$16 sm:%s35_s12]   ;;  %s241_s16 = smov 60   ;;  %s23_s19 = smov 3 }
   0x3   :  { %v17_v2 = vsel %vm6_vm0, %v197_v1, %v196_v0  ;;  %v201_v4 = vld [vmem:[%s381_s0 + $0xd] ss:$16 sm:%s38_s15]   ;;  %s26_s20 = smov 12  ;;  %v198_v6 = vld [vmem:[%s381_s0 + $0xe] ss:$16 sm:%s23_s19]   ;;  %s47_s25 = smov 3 }
   0x4   :  { %18 = vrot.lane.b32.xlu0 %v17_v2, %s241_s16  ;;  %v41_v5 = vsel %vm6_vm0, %v201_v4, %v200_v3  ;;  %v199_v7 = vld [vmem:[%s381_s0 + $0xe] ss:$16 sm:%s26_s20]   ;;  %s242_s26 = smov 52   ;;  %s50_s29 = smov 12  ;;  %vm68_vm6 = vcmask 392544   ;;  %vm80_vm7 = vcmask 359744  }
   0x5   :  { %42 = vrot.lane.b32.xlu1 %v41_v5, %s242_s26  ;;  %v29_v8 = vsel %vm6_vm0, %v199_v7, %v198_v6  ;;  %v202_v9 = vld [vmem:[%s381_s0 + $0xc] ss:$16 sm:%s47_s25]   ;;  %s59_s3 = smov 3  ;;  %s62_s4 = smov 12  ;;  %vm92_vm8 = vcmask 326944   ;;  %vm104_vm9 = vcmask 294144  }
   0x6   :  { %v203_v10 = vld [vmem:[%s381_s0 + $0xc] ss:$16 sm:%s50_s29]   ;;  %s243_s5 = smov 56   ;;  %v204_v12 = vld [vmem:[%s381_s0 + $0xb] ss:$16 sm:%s59_s3]   ;;  %s71_s8 = smov 3 }
   0x7   :  { %v53_v11 = vsel %vm6_vm0, %v203_v10, %v202_v9  ;;  %v205_v13 = vld [vmem:[%s381_s0 + $0xb] ss:$16 sm:%s62_s4]   ;;  %v206_v14 = vld [vmem:[%s381_s0 + $0xa] ss:$16 sm:%s71_s8]   ;;  %s74_s13 = smov 12  ;;  %s244_s14 = smov 48  }
   0x8   :  { %30 = vrot.lane.b32.xlu0 %v29_v8, %s243_s5  ;;  %v65_v15 = vsel %vm6_vm0, %v205_v13, %v204_v12  ;;  %v207_v16 = vld [vmem:[%s381_s0 + $0xa] ss:$16 sm:%s74_s13]   ;;  %s83_s17 = smov 3  ;;  %s86_s18 = smov 12  ;;  %vm116_vm10 = vcmask 261344   ;;  %vm128_vm11 = vcmask 228544  }
   0x9   :  { %54 = vrot.lane.b32.xlu1 %v53_v11, %s244_s14  ;;  %v77_v17 = vsel %vm6_vm0, %v207_v16, %v206_v14  ;;  %v208_v18 = vld [vmem:[%s381_s0 + $0x9] ss:$16 sm:%s83_s17]   ;;  %s95_s23 = smov 3  ;;  %s245_s24 = smov 44   ;;  %vm140_vm12 = vcmask 195744   ;;  %vm152_vm13 = vcmask 162944  }
   0xa   :  { %v209_v19 = vld [vmem:[%s381_s0 + $0x9] ss:$16 sm:%s86_s18]   ;;  %v210_v20 = vld [vmem:[%s381_s0 + $0x8] ss:$16 sm:%s95_s23]   ;;  %s98_s27 = smov 12  ;;  %s107_s30 = smov 3 }
   0xb   :  { %v89_v21 = vsel %vm6_vm0, %v209_v19, %v208_v18  ;;  %v211_v22 = vld [vmem:[%s381_s0 + $0x8] ss:$16 sm:%s98_s27]   ;;  %s110_s2 = smov 12  ;;  %s246_s3 = smov 40   ;;  %v212_v23 = vld [vmem:[%s381_s0 + $0x7] ss:$16 sm:%s107_s30]  }
   0xc   :  { %66 = vrot.lane.b32.xlu0 %v65_v15, %s245_s24  ;;  %s119_s6 = smov 3  ;;  %v101_v24 = vsel %vm6_vm0, %v211_v22, %v210_v20  ;;  %v213_v25 = vld [vmem:[%s381_s0 + $0x7] ss:$16 sm:%s110_s2]   ;;  %s122_s11 = smov 12  ;;  %vm164_vm14 = vcmask 130144   ;;  %vm176_vm15 = vcmask 97344  }
   0xd   :  { %78 = vrot.lane.b32.xlu1 %v77_v17, %s246_s3  ;;  %v214_v26 = vld [vmem:[%s381_s0 + $0x6] ss:$16 sm:%s119_s6]   ;;  %s247_s12 = smov 36   ;;  %s131_s15 = smov 3  ;;  %v113_v28 = vsel %vm6_vm0, %v213_v25, %v212_v23 }
   0xe   :  { %v215_v27 = vld [vmem:[%s381_s0 + $0x6] ss:$16 sm:%s122_s11]   ;;  %s134_s16 = smov 12  ;;  %v216_v29 = vld [vmem:[%s381_s0 + $0x5] ss:$16 sm:%s131_s15]   ;;  %s143_s19 = smov 3 }
   0xf   :  { %s248_s20 = smov 32   ;;  %v217_v30 = vld [vmem:[%s381_s0 + $0x5] ss:$16 sm:%s134_s16]   ;;  %s146_s23 = smov 12  ;;  %v125_v31 = vsel %vm6_vm0, %v215_v27, %v214_v26  ;;  %v218_v32 = vld [vmem:[%s381_s0 + $0x4] ss:$16 sm:%s143_s19]  }
  0x10   :  { %90 = vrot.lane.b32.xlu0 %v89_v21, %s247_s12  ;;  %s155_s26 = smov 3  ;;  %s158_s27 = smov 12  ;;  %v219_v33 = vld [vmem:[%s381_s0 + $0x4] ss:$16 sm:%s146_s23]   ;;  %v137_v34 = vsel %vm6_vm0, %v217_v30, %v216_v29 }
  0x11   :  { %102 = vrot.lane.b32.xlu1 %v101_v24, %s248_s20  ;;  %s249_s28 = smov 28   ;;  %s167_s2 = smov 3  ;;  %v220_v35 = vld [vmem:[%s381_s0 + $0x3] ss:$16 sm:%s155_s26]   ;;  %v149_v37 = vsel %vm6_vm0, %v219_v33, %v218_v32 }
  0x12   :  { %s170_s5 = smov 12  ;;  %s250_s6 = smov 24   ;;  %v221_v36 = vld [vmem:[%s381_s0 + $0x3] ss:$16 sm:%s158_s27]   ;;  %v222_v38 = vld [vmem:[%s381_s0 + $0x2] ss:$16 sm:%s167_s2]  }
  0x13   :  { %s179_s9 = smov 3  ;;  %v223_v39 = vld [vmem:[%s381_s0 + $0x2] ss:$16 sm:%s170_s5]   ;;  %s182_s14 = smov 12  ;;  %v161_v41 = vsel %vm6_vm0, %v221_v36, %v220_v35 }
  0x14   :  { %114 = vrot.lane.b32.xlu0 %v113_v28, %s249_s28  ;;  %s2_s15 = smov 3  ;;  %s251_s16 = smov 20   ;;  %v224_v42 = vld [vmem:[%s381_s0 + $0x1] ss:$16 sm:%s179_s9]   ;;  %v173_v46 = vsel %vm6_vm0, %v223_v39, %v222_v38 }
  0x15   :  { %126 = vrot.lane.b32.xlu1 %v125_v31, %s250_s6  ;;  %v3_v40 = vld [vmem:[%s381_s0] ss:$16 sm:%s2_s15]   ;;  %s4_s19 = smov 12  ;;  %s252_s24 = smov 16  }
  0x16   :  { %v5_v43 = vld [vmem:[%s381_s0] ss:$16 sm:%s4_s19]   ;;  %v225_v44 = vld [vmem:[%s381_s0 + $0x1] ss:$16 sm:%s182_s14]   ;;  %s253_s0 = smov 12   ;;  %s254_s27 = smov 8  }
  0x17   :  { %v7_v45 = vsel %vm6_vm0, %v5_v43, %v3_v40  ;;  %v185_v47 = vsel %vm6_vm0, %v225_v44, %v224_v42  ;;  %s255_s28 = smov 4   ;;  %vm188_vm0 = vcmask 64544  }
  0x18   :  { %138 = vrot.lane.b32.xlu0 %v137_v34, %s251_s16  ;;  %9 = vst.msk [vmem:[#allocation0] sm:$0xf] %vm8_vm1, %v7_v45  }
  0x19   :  { %150 = vrot.lane.b32.xlu1 %v149_v37, %s252_s24 }
  0x1c   :  { %162 = vrot.lane.b32.xlu0 %v161_v41, %s253_s0 }
  0x1d   :  { %174 = vrot.lane.b32.xlu1 %v173_v46, %s254_s27 }
  0x20   :  { %186 = vrot.lane.b32.xlu0 %v185_v47, %s255_s28 }
  0x76   :  { %v19_v48 = vpop.permute.xlu0 %18  }
  0x77   :  { %21 = vst.msk [vmem:[#allocation0] sm:$0xf] %vm20_vm2, %v19_v48   ;;  %v43_v49 = vpop.permute.xlu1 %42  }
  0x7a   :  { %v31_v50 = vpop.permute.xlu0 %30  }
  0x7b   :  { %33 = vst.msk [vmem:[#allocation0] sm:$0xf] %vm32_vm3, %v31_v50   ;;  %v55_v51 = vpop.permute.xlu1 %54  }
  0x7c   :  { %45 = vst.msk [vmem:[#allocation0] sm:$0xf] %vm44_vm4, %v43_v49  }
  0x7d   :  { %57 = vst.msk [vmem:[#allocation0] sm:$0xf] %vm56_vm5, %v55_v51  }
  0x7e   :  { %v67_v52 = vpop.permute.xlu0 %66  }
  0x7f   :  { %69 = vst.msk [vmem:[#allocation0] sm:$0xf] %vm68_vm6, %v67_v52   ;;  %v79_v53 = vpop.permute.xlu1 %78  }
  0x80   :  { %81 = vst.msk [vmem:[#allocation0] sm:$0xf] %vm80_vm7, %v79_v53  }
  0x82   :  { %v91_v54 = vpop.permute.xlu0 %90  }
  0x83   :  { %93 = vst.msk [vmem:[#allocation0] sm:$0xf] %vm92_vm8, %v91_v54   ;;  %v103_v55 = vpop.permute.xlu1 %102  }
  0x84   :  { %105 = vst.msk [vmem:[#allocation0] sm:$0xf] %vm104_vm9, %v103_v55  }
  0x86   :  { %v115_v56 = vpop.permute.xlu0 %114  }
  0x87   :  { %117 = vst.msk [vmem:[#allocation0] sm:$0xf] %vm116_vm10, %v115_v56   ;;  %v127_v57 = vpop.permute.xlu1 %126  }
  0x88   :  { %129 = vst.msk [vmem:[#allocation0] sm:$0xf] %vm128_vm11, %v127_v57  }
  0x8a   :  { %v139_v58 = vpop.permute.xlu0 %138  }
  0x8b   :  { %141 = vst.msk [vmem:[#allocation0] sm:$0xf] %vm140_vm12, %v139_v58   ;;  %v151_v59 = vpop.permute.xlu1 %150  }
  0x8c   :  { %153 = vst.msk [vmem:[#allocation0] sm:$0xf] %vm152_vm13, %v151_v59  }
  0x8e   :  { %v163_v60 = vpop.permute.xlu0 %162  }
  0x8f   :  { %165 = vst.msk [vmem:[#allocation0] sm:$0xf] %vm164_vm14, %v163_v60   ;;  %v175_v61 = vpop.permute.xlu1 %174  }
  0x90   :  { %177 = vst.msk [vmem:[#allocation0] sm:$0xf] %vm176_vm15, %v175_v61  }
  0x92   :  { %v187_v62 = vpop.permute.xlu0 %186  }
  0x93   :  { %189 = vst.msk [vmem:[#allocation0] sm:$0xf] %vm188_vm0, %v187_v62  }
  0x9a   :  { %v193_v63 = vld [vmem:[#allocation0] sm:$0xf] }
  0x9b   :  { %195 = vst [vmem:[%s382_s1] sm:$0xf] %v193_v63 }

// kernel: residual_blocks_forward.1
= control target key start
LH: loop header
LB: loop body
LE: loop exit
PB: predicated region body
PF: predicated region fallthrough
CT: control target
= control target key end

     0   :  { %v3391_v3 = vmov 0.0|0.0   ;;  %vm81_vm0 = vcmask 1046528   ;;  %s3392_s30 = smov 64   ;;  %vm104_vm1 = vcmask 523264   ;;  %vm68_vm2 = vcmask 1040384   ;;  %s4338_s0 = inlined_call_operand.vmem [shape: f32[2,16,64], index: 0, kind: input, shape index: {}]   ;;  %s4339_s1 = inlined_call_operand.vmem [shape: f32[2,2,192,64], index: 1, kind: input, shape index: {}]   ;;  %s4340_s5 = inlined_call_operand.vmem [shape: f32[64,4], index: 5, kind: input, shape index: {}]   ;;  %s4341_s2 = inlined_call_operand.vmem [shape: f32[2,2,1,64], index: 2, kind: input, shape index: {}]   ;;  %s4342_s6 = inlined_call_operand.vmem [shape: f32[4,64], index: 6, kind: input, shape index: {}]   ;;  %s4343_s3 = inlined_call_operand.vmem [shape: f32[2,2,2,64], index: 3, kind: input, shape index: {}]   ;;  %s4344_s4 = inlined_call_operand.vmem [shape: f32[2,2,2,64], index: 4, kind: input, shape index: {}]   ;;  %s4345_s7 = inlined_call_operand.vmem [shape: f32[2,16,64], index: 7, kind: output, shape index: {}]  }
   0x1   :  { %v3439_v0 = vld [vmem:[%s4338_s0] sm:$0xff]  ;;  %v3444_v1 = vld [vmem:[%s4338_s0 + $0x8] sm:$0xff]  ;;  %v3449_v2 = vld [vmem:[%s4338_s0 + $0x10] sm:$0xff]  ;;  %3133 = vmatprep.subr.bf16.mxu0 %v3391_v3  ;;  %3169 = vmatprep.subr.bf16.mxu1 %v3391_v3  ;;  %vm3393_vm3 = vmmov 0   ;;  %vm236_vm4 = vcmask 1041409   ;;  %vm314_vm5 = vcmask 1043456  }
   0x2   :  { %92 = vrot.lane.b32.xlu0 %v3439_v0, %s3392_s30  ;;  %96 = vrot.lane.b32.xlu1 %v3449_v2, %s3392_s30  ;;  %v39_v4 = vld [vmem:[%s4339_s1] sm:$0xff]  ;;  %v82_v5 = vrot.slane %v3439_v0, 1  ;;  %v83_v6 = vrot.slane %v3444_v1, 1  ;;  %v3465_v7 = vld [vmem:[%s4338_s0 + $0x18] sm:$0xff]  ;;  %v69_v44 = vrot.slane %v3439_v0, 7  ;;  %v70_v45 = vrot.slane %v3444_v1, 7 }
   0x3   :  { %v40_v8 = vld [vmem:[%s4339_s1 + $0x8] sm:$0xff]  ;;  %v41_v10 = vld [vmem:[%s4339_s1 + $0x10] sm:$0xff]  ;;  %v42_v11 = vld [vmem:[%s4339_s1 + $0x18] sm:$0xff]  ;;  %v85_v47 = vrot.slane %v3449_v2, 1  ;;  %v86_v48 = vrot.slane %v3465_v7, 1  ;;  %v72_v51 = vrot.slane %v3449_v2, 7 }
   0x4   :  { %v3134_v9 = vpack.c.bf16 %v40_v8, %v39_v4  ;;  %v84_v12 = vsel %vm81_vm0, %v82_v5, %v83_v6  ;;  %v3137_v13 = vpack.c.bf16 %v42_v11, %v41_v10  ;;  %v43_v14 = vld [vmem:[%s4339_s1 + $0x20] sm:$0xff]  ;;  %v44_v15 = vld [vmem:[%s4339_s1 + $0x28] sm:$0xff]  ;;  %v45_v17 = vld [vmem:[%s4339_s1 + $0x30] sm:$0xff]  ;;  %v79_v46 = vsel %vm68_vm2, 0.0, %v69_v44 }
   0x5   :  { %2720 = vmatprep.mubr.msk.f32.mxu0 %vm104_vm1, %v84_v12  ;;  %v3140_v16 = vpack.c.bf16 %v44_v15, %v43_v14  ;;  %v46_v18 = vld [vmem:[%s4339_s1 + $0x38] sm:$0xff]  ;;  %v47_v20 = vld [vmem:[%s4339_s1 + $0x40] sm:$0xff]  ;;  %v48_v21 = vld [vmem:[%s4339_s1 + $0x48] sm:$0xff]  ;;  %v90_v50 = vsel %vm81_vm0, %v83_v6, 0.0  ;;  %v71_v53 = vsel %vm68_vm2, %v69_v44, %v70_v45  ;;  %v73_v55 = vrot.slane %v3465_v7, 7 }
   0x6   :  { %94 = vrot.lane.b32.xlu0 %v3444_v1, %s3392_s30  ;;  %98 = vrot.lane.b32.xlu1 %v3465_v7, %s3392_s30  ;;  %v3143_v19 = vpack.c.bf16 %v46_v18, %v45_v17  ;;  %v3146_v22 = vpack.c.bf16 %v48_v21, %v47_v20  ;;  %v49_v23 = vld [vmem:[%s4339_s1 + $0x50] sm:$0xff]  ;;  %v50_v24 = vld [vmem:[%s4339_s1 + $0x58] sm:$0xff]  ;;  %v87_v57 = vsel %vm81_vm0, %v85_v47, %v86_v48  ;;  %v80_v58 = vsel %vm68_vm2, 0.0, %v72_v51 }
   0x7   :  { %3135 = vmatpush1.bf16.msra.mxu0 %v3134_v9  ;;  %v3149_v25 = vpack.c.bf16 %v50_v24, %v49_v23  ;;  %v51_v26 = vld [vmem:[%s4339_s1 + $0x60] sm:$0xff]  ;;  %v52_v27 = vld [vmem:[%s4339_s1 + $0x68] sm:$0xff]  ;;  %v53_v29 = vld [vmem:[%s4339_s1 + $0x70] sm:$0xff]  ;;  %v91_v62 = vsel %vm81_vm0, %v86_v48, 0.0  ;;  %v74_v63 = vsel %vm68_vm2, %v72_v51, %v73_v55  ;;  %v3394_v14 = vmov 0.0  }
   0x8   :  { %3136 = vmatprep.subr.bf16.mxu0 %v3391_v3  ;;  %v3152_v28 = vpack.c.bf16 %v52_v27, %v51_v26  ;;  %v54_v30 = vld [vmem:[%s4339_s1 + $0x78] sm:$0xff]  ;;  %v55_v32 = vld [vmem:[%s4339_s1 + $0x80] sm:$0xff]  ;;  %v56_v33 = vld [vmem:[%s4339_s1 + $0x88] sm:$0xff]  ;;  %2957 = vmatprep.mubr.msk.f32.mxu1 %vm3393_vm3, %v3394_v14  ;;  %vm310_vm6 = vcmask 31744  }
   0x9   :  { %v3155_v31 = vpack.c.bf16 %v54_v30, %v53_v29  ;;  %v3158_v34 = vpack.c.bf16 %v56_v33, %v55_v32  ;;  %v57_v35 = vld [vmem:[%s4339_s1 + $0x90] sm:$0xff]  ;;  %v58_v36 = vld [vmem:[%s4339_s1 + $0x98] sm:$0xff]  ;;  %v59_v38 = vld [vmem:[%s4339_s1 + $0xa0] sm:$0xff] }
   0xa   :  { %v3161_v37 = vpack.c.bf16 %v58_v36, %v57_v35  ;;  %v60_v39 = vld [vmem:[%s4339_s1 + $0xa8] sm:$0xff]  ;;  %v61_v41 = vld [vmem:[%s4339_s1 + $0xb0] sm:$0xff]  ;;  %v62_v42 = vld [vmem:[%s4339_s1 + $0xb8] sm:$0xff] }
   0xb   :  { %3138 = vmatpush1.bf16.msra.mxu0 %v3137_v13  ;;  %v3164_v40 = vpack.c.bf16 %v60_v39, %v59_v38  ;;  %v3167_v43 = vpack.c.bf16 %v62_v42, %v61_v41  ;;  %v30_v1 = vld [vmem:[%s4340_s5] sm:$0xff]  ;;  %v31_v2 = vld [vmem:[%s4340_s5 + $0x8] sm:$0xff]  ;;  %v32_v5 = vld [vmem:[%s4340_s5 + $0x10] sm:$0xff] }
   0xc   :  { %3139 = vmatprep.subr.bf16.mxu0 %v3391_v3  ;;  %v3584_v4 = vpack.c.bf16 %v31_v2, %v30_v1  ;;  %v33_v6 = vld [vmem:[%s4340_s5 + $0x18] sm:$0xff]  ;;  %v34_v8 = vld [vmem:[%s4340_s5 + $0x20] sm:$0xff]  ;;  %v35_v9 = vld [vmem:[%s4340_s5 + $0x28] sm:$0xff] }
   0xd   :  { %v3596_v7 = vpack.c.bf16 %v33_v6, %v32_v5  ;;  %v3608_v10 = vpack.c.bf16 %v35_v9, %v34_v8  ;;  %v36_v11 = vld [vmem:[%s4340_s5 + $0x30] sm:$0xff]  ;;  %v37_v12 = vld [vmem:[%s4340_s5 + $0x38] sm:$0xff]  ;;  %v2724_v15 = vld [vmem:[%s4341_s2] ss:$0 sm:$0xff] }
   0xe   :  { %3171 = vmatpush3.bf16.msra.mxu1 %v3584_v4  ;;  %v3620_v13 = vpack.c.bf16 %v37_v12, %v36_v11 }
   0xf   :  { %3141 = vmatpush1.bf16.msra.mxu0 %v3140_v16  ;;  %3172 = vmatprep.subr.bf16.mxu1 %v3391_v3 }
  0x10   :  { %3142 = vmatprep.subr.bf16.mxu0 %v3391_v3 }
  0x12   :  { %3174 = vmatpush3.bf16.msra.mxu1 %v3596_v7 }
  0x13   :  { %3144 = vmatpush1.bf16.msra.mxu0 %v3143_v19  ;;  %3175 = vmatprep.subr.bf16.mxu1 %v3391_v3 }
  0x14   :  { %3145 = vmatprep.subr.bf16.mxu0 %v3391_v3 }
  0x16   :  { %3177 = vmatpush3.bf16.msra.mxu1 %v3608_v10 }
  0x17   :  { %3147 = vmatpush1.bf16.msra.mxu0 %v3146_v22  ;;  %3178 = vmatprep.subr.bf16.mxu1 %v3391_v3 }
  0x18   :  { %3148 = vmatprep.subr.bf16.mxu0 %v3391_v3 }
  0x1a   :  { %3180 = vmatpush3.bf16.msra.mxu1 %v3620_v13 }
  0x1b   :  { %3150 = vmatpush1.bf16.msra.mxu0 %v3149_v25  ;;  %2960 = vmatprep.subr.mxu1 %v3394_v14 }
  0x1c   :  { %3151 = vmatprep.subr.bf16.mxu0 %v3391_v3 }
  0x1f   :  { %3153 = vmatpush1.bf16.msra.mxu0 %v3152_v28 }
  0x20   :  { %3154 = vmatprep.subr.bf16.mxu0 %v3391_v3 }
  0x23   :  { %3156 = vmatpush1.bf16.msra.mxu0 %v3155_v31 }
  0x24   :  { %3157 = vmatprep.subr.bf16.mxu0 %v3391_v3 }
  0x27   :  { %3159 = vmatpush1.bf16.msra.mxu0 %v3158_v34 }
  0x28   :  { %3160 = vmatprep.subr.bf16.mxu0 %v3391_v3 }
  0x2b   :  { %3162 = vmatpush1.bf16.msra.mxu0 %v3161_v37 }
  0x2c   :  { %3163 = vmatprep.subr.bf16.mxu0 %v3391_v3 }
  0x2f   :  { %3165 = vmatpush1.bf16.msra.mxu0 %v3164_v40 }
  0x30   :  { %3166 = vmatprep.subr.bf16.mxu0 %v3391_v3 }
  0x33   :  { %3168 = vmatpush1.bf16.msra.mxu0 %v3167_v43 }
  0x34   :  { %3229 = vmatprep.subr.bf16.mxu0 %v3391_v3 }
  0x74   :  { %v93_v49 = vpop.permute.xlu0 %92  ;;  %v97_v54 = vpop.permute.xlu1 %96 }
  0x75   :  { %v105_v52 = vsel %vm104_vm1, %v79_v46, %v93_v49  ;;  %v107_v60 = vsel %vm104_vm1, %v80_v58, %v97_v54  ;;  %v3646_v46 = vld [vmem:[%s4342_s6] sm:$0xf] }
  0x76   :  { %184 = vmatmul.mubr.f32.vlgmr.msra.gmra.mrb[0].mxu0 %v105_v52  ;;  %v392_v52 = vlaneseq }
  0x77   :  { %2721 = vmatprep.mubr.msk.f32.mxu0 %vm104_vm1, %v90_v50  ;;  %3231 = vmatpush3.bf16.msra.mxu0 %v3584_v4  ;;  %v3395_v50 = vmov 1966171168  }
  0x78   :  { %v95_v56 = vpop.permute.xlu0 %94  ;;  %v99_v61 = vpop.permute.xlu1 %98  ;;  %3232 = vmatprep.subr.bf16.mxu0 %v3391_v3  ;;  %v390_v51 = vunpack.c.l.s4 %v3395_v50  ;;  %v393_v54 = vshrl.u32 %v392_v52, 7  ;;  %v2742_v52 = vld [vmem:[%s4339_s1 + $0x108] sm:$0xff] }
  0x79   :  { %v106_v59 = vsel %vm104_vm1, %v71_v53, %v95_v56  ;;  %v108_v0 = vsel %vm104_vm1, %v74_v63, %v99_v61 }
  0x7a   :  { %189 = vmatmul.mubr.f32.gmra.mrb[2].mxu0 %v106_v59  ;;  %v391_v53 = vunpack.c.0.s8 %v390_v51  ;;  %v3669_v58 = vsub.s32 0, %v393_v54  ;;  %v2741_v51 = vld [vmem:[%s4339_s1 + $0x100] sm:$0xff] }
  0x7b   :  { %2722 = vmatprep.mubr.msk.f32.mxu0 %vm104_vm1, %v87_v57  ;;  %3234 = vmatpush3.bf16.msra.mxu0 %v3596_v7 }
  0x7c   :  { %3235 = vmatprep.subr.bf16.mxu0 %v3391_v3  ;;  %v3666_v55 = vsub.s32 %v391_v53, %v393_v54  ;;  %v3206_v53 = vpack.c.bf16 %v2742_v52, %v2741_v51  ;;  %v2743_v54 = vld [vmem:[%s4339_s1 + $0x110] sm:$0xff] }
  0x7e   :  { %194 = vmatmul.mubr.f32.gmra.mrb[4].mxu0 %v107_v60 }
  0x7f   :  { %2723 = vmatprep.mubr.msk.f32.mxu0 %vm104_vm1, %v91_v62  ;;  %3237 = vmatpush3.bf16.msra.mxu0 %v3608_v10 }
  0x80   :  { %3238 = vmatprep.subr.bf16.mxu0 %v3391_v3 }
  0x82   :  { %199 = vmatmul.mubr.f32.gmra.mrb[6].mxu0 %v108_v0 }
  0x83   :  { %3005 = vmatprep.mubr.msk.f32.mxu0 %vm3393_vm3, %v3394_v14  ;;  %3240 = vmatpush3.bf16.msra.mxu0 %v3620_v13 }
  0x84   :  { %3008 = vmatprep.subr.mxu0 %v3394_v14 }
 0x149   :  { %v185_v16 = vpop.f32.mrb[0].mxu0 }
 0x14a   :  { %v187_v17 = vpop.f32.mrb[1].mxu0  ;;  %v3633_v18 = vadd.f32 %v2724_v15, %v185_v16 }
 0x14c   :  { %v216_v22 = vsel %vm104_vm1, %v3633_v18, 0.0 }
 0x14d   :  { %v190_v19 = vpop.f32.mrb[2].mxu0 }
 0x14e   :  { %v3635_v20 = vadd.f32 %v2724_v15, %v190_v19  ;;  %v192_v21 = vpop.f32.mrb[3].mxu0 }
 0x150   :  { %v217_v23 = vsel %vm104_vm1, %v3635_v20, 0.0 }
 0x151   :  { %v218_v24 = vadd.f32 %v217_v23, %v216_v22  ;;  %v195_v25 = vpop.f32.mrb[4].mxu0 }
 0x152   :  { %v197_v26 = vpop.f32.mrb[5].mxu0  ;;  %v212_v28 = vadd.f32 %v2724_v15, %v195_v25 }
 0x153   :  { %v219_v27 = vrot.slane %v218_v24, 4 }
 0x154   :  { %v225_v33 = vsel %vm104_vm1, %v212_v28, 0.0 }
 0x155   :  { %v220_v29 = vadd.f32 %v219_v27, %v218_v24  ;;  %v200_v30 = vpop.f32.mrb[6].mxu0 }
 0x156   :  { %v213_v31 = vadd.f32 %v2724_v15, %v200_v30  ;;  %v202_v32 = vpop.f32.mrb[7].mxu0 }
 0x157   :  { %v221_v35 = vrot.slane %v220_v29, 2 }
 0x158   :  { %v226_v34 = vsel %vm104_vm1, %v213_v31, 0.0 }
 0x159   :  { %v227_v36 = vadd.f32 %v226_v34, %v225_v33  ;;  %v222_v38 = vadd.f32 %v221_v35, %v220_v29 }
 0x15b   :  { %v228_v37 = vrot.slane %v227_v36, 4  ;;  %v223_v41 = vrot.slane %v222_v38, 1 }
 0x15d   :  { %v229_v39 = vadd.f32 %v228_v37, %v227_v36  ;;  %v224_v44 = vadd.f32 %v223_v41, %v222_v38  ;;  %v2733_v38 = vld [vmem:[%s4339_s1 + $0xc0] sm:$0xff] }
 0x15f   :  { %v230_v40 = vrot.slane %v229_v39, 2 }
 0x161   :  { %v231_v42 = vadd.f32 %v230_v40, %v229_v39  ;;  %v2734_v39 = vld [vmem:[%s4339_s1 + $0xc8] sm:$0xff]  ;;  %v2735_v40 = vld [vmem:[%s4339_s1 + $0xd0] sm:$0xff] }
 0x162   :  { %v3194_v41 = vpack.c.bf16 %v2734_v39, %v2733_v38 }
 0x163   :  { %v232_v43 = vrot.slane %v231_v42, 1 }
 0x165   :  { %v233_v45 = vadd.f32 %v232_v43, %v231_v42  ;;  %v2736_v42 = vld [vmem:[%s4339_s1 + $0xd8] sm:$0xff] }
 0x166   :  { %v3197_v43 = vpack.c.bf16 %v2736_v42, %v2735_v40 }
 0x167   :  { %v237_v47 = vsel %vm236_vm4, %v233_v45, %v224_v44  ;;  %v2737_v44 = vld [vmem:[%s4339_s1 + $0xe0] sm:$0xff]  ;;  %v2738_v45 = vld [vmem:[%s4339_s1 + $0xe8] sm:$0xff] }
 0x168   :  { %2958 = vmatmul.mubr.msk.f32.vlgmr.msra.gmra.mrb[0].mxu1 %vm104_vm1, %v237_v47  ;;  %v3200_v47 = vpack.c.bf16 %v2738_v45, %v2737_v44 }
 0x169   :  { %2961 = vmatpush3.msk.msra.mxu1 %vm314_vm5, %v3646_v46  ;;  %2962 = vmatprep.mubr.msk.f32.mxu1 %vm3393_vm3, %v3394_v14 }
 0x16a   :  { %3181 = vmatprep.subr.bf16.mxu1 %v3391_v3 }
 0x23b   :  { %v306_v48 = vpop.f32.mrb[0].mxu1 }
 0x23c   :  { %v2959_v49 = vpop.f32.mrb[1].mxu1  ;;  %2963 = vmatmul.mubr.msk.f32.vlgmr.msra.gmra.mrb[2].mxu1 %vm310_vm6, %v306_v48  ;;  %v2739_v48 = vld [vmem:[%s4339_s1 + $0xf0] sm:$0xff] }
 0x23d   :  { %3183 = vmatpush3.bf16.msra.mxu1 %v3584_v4  ;;  %2981 = vmatprep.mubr.msk.f32.mxu1 %vm3393_vm3, %v3394_v14  ;;  %v2740_v49 = vld [vmem:[%s4339_s1 + $0xf8] sm:$0xff] }
 0x23e   :  { %3184 = vmatprep.subr.bf16.mxu1 %v3391_v3  ;;  %v3203_v50 = vpack.c.bf16 %v2740_v49, %v2739_v48 }
 0x241   :  { %3186 = vmatpush3.bf16.msra.mxu1 %v3596_v7 }
 0x242   :  { %3187 = vmatprep.subr.bf16.mxu1 %v3391_v3 }
 0x245   :  { %3189 = vmatpush3.bf16.msra.mxu1 %v3608_v10 }
 0x246   :  { %3190 = vmatprep.subr.bf16.mxu1 %v3391_v3 }
 0x249   :  { %3192 = vmatpush3.bf16.msra.mxu1 %v3620_v13 }
 0x24a   :  { %2984 = vmatprep.subr.mxu1 %v3394_v14 }
 0x30f   :  { %v384_v56 = vpop.f32.mrb[2].mxu1 }
 0x310   :  { %v395_v57 = vrot.slane %v384_v56, %v3666_v55  ;;  %v2964_v59 = vpop.f32.mrb[3].mxu1  ;;  %v2744_v56 = vld [vmem:[%s4339_s1 + $0x118] sm:$0xff] }
 0x311   :  { %v2745_v59 = vld [vmem:[%s4339_s1 + $0x120] sm:$0xff] }
 0x312   :  { %v396_v60 = vcombine.high %v395_v57, %v395_v57  ;;  %v403_v61 = vrot.slane %v395_v57, %v3666_v55  ;;  %v3209_v57 = vpack.c.bf16 %v2744_v56, %v2743_v54 }
 0x314   :  { %v410_v62 = vrot.slane %v396_v60, %v3666_v55  ;;  %v414_v63 = vrot.slane %v403_v61, %v3669_v58  ;;  %v2746_v60 = vld [vmem:[%s4339_s1 + $0x128] sm:$0xff] }
 0x315   :  { %v3212_v61 = vpack.c.bf16 %v2746_v60, %v2745_v59 }
 0x316   :  { %v418_v0 = vrot.slane %v410_v62, %v3669_v58  ;;  %v3676_v1 = vsub.f32 %v3633_v18, %v414_v63  ;;  %v3679_v2 = vsub.f32 %v3635_v20, %v414_v63  ;;  %v2747_v62 = vld [vmem:[%s4339_s1 + $0x130] sm:$0xff]  ;;  %v2748_v63 = vld [vmem:[%s4339_s1 + $0x138] sm:$0xff] }
 0x318   :  { %v3681_v5 = vsub.f32 %v212_v28, %v418_v0  ;;  %v3683_v6 = vsub.f32 %v213_v31, %v418_v0  ;;  %v425_v8 = vmul.f32 %v3676_v1, %v3676_v1  ;;  %v426_v9 = vmul.f32 %v3679_v2, %v3679_v2 }
 0x319   :  { %v3215_v0 = vpack.c.bf16 %v2748_v63, %v2747_v62 }
 0x31a   :  { %v427_v11 = vmul.f32 %v3681_v5, %v3681_v5  ;;  %v428_v12 = vmul.f32 %v3683_v6, %v3683_v6  ;;  %v429_v15 = vsel %vm104_vm1, %v425_v8, 0.0  ;;  %v430_v16 = vsel %vm104_vm1, %v426_v9, 0.0  ;;  %v2749_v8 = vld [vmem:[%s4339_s1 + $0x140] sm:$0xff]  ;;  %v2750_v9 = vld [vmem:[%s4339_s1 + $0x148] sm:$0xff] }
 0x31b   :  { %v431_v17 = vadd.f32 %v430_v16, %v429_v15  ;;  %v2752_v15 = vld [vmem:[%s4339_s1 + $0x158] sm:$0xff] }
 0x31c   :  { %v438_v18 = vsel %vm104_vm1, %v427_v11, 0.0  ;;  %v439_v19 = vsel %vm104_vm1, %v428_v12, 0.0  ;;  %v3218_v11 = vpack.c.bf16 %v2750_v9, %v2749_v8  ;;  %v2751_v12 = vld [vmem:[%s4339_s1 + $0x150] sm:$0xff] }
 0x31d   :  { %v432_v20 = vrot.slane %v431_v17, 4  ;;  %v440_v21 = vadd.f32 %v439_v19, %v438_v18  ;;  %v3221_v16 = vpack.c.bf16 %v2752_v15, %v2751_v12  ;;  %v2754_v18 = vld [vmem:[%s4339_s1 + $0x168] sm:$0xff] }
 0x31f   :  { %v433_v22 = vadd.f32 %v432_v20, %v431_v17  ;;  %v441_v23 = vrot.slane %v440_v21, 4  ;;  %v2753_v17 = vld [vmem:[%s4339_s1 + $0x160] sm:$0xff]  ;;  %v2755_v20 = vld [vmem:[%s4339_s1 + $0x170] sm:$0xff] }
 0x320   :  { %v3224_v19 = vpack.c.bf16 %v2754_v18, %v2753_v17 }
 0x321   :  { %v434_v24 = vrot.slane %v433_v22, 2  ;;  %v442_v25 = vadd.f32 %v441_v23, %v440_v21  ;;  %v2756_v21 = vld [vmem:[%s4339_s1 + $0x178] sm:$0xff]  ;;  %v2731_v23 = vld.sshfl [vmem:[%s4343_s3] sm:$0x11 pattern:$0x75316420] }
 0x323   :  { %v435_v26 = vadd.f32 %v434_v24, %v433_v22  ;;  %v443_v27 = vrot.slane %v442_v25, 2  ;;  %v3227_v22 = vpack.c.bf16 %v2756_v21, %v2755_v20  ;;  %v2732_v24 = vld.sshfl [vmem:[%s4344_s4] sm:$0x11 pattern:$0x75316420] }
 0x325   :  { %v436_v28 = vrot.slane %v435_v26, 1  ;;  %v444_v29 = vadd.f32 %v443_v27, %v442_v25  ;;  %v641_v25 = vcombine.high %v2731_v23, %v2731_v23  ;;  %v678_v27 = vcombine.high %v2732_v24, %v2732_v24 }
 0x327   :  { %v445_v30 = vrot.slane %v444_v29, 1  ;;  %v437_v31 = vadd.f32 %v436_v28, %v435_v26 }
 0x329   :  { %v446_v32 = vadd.f32 %v445_v30, %v444_v29  ;;  %v648_v30 = vrot.slane %v2731_v23, %v3666_v55 }
 0x32b   :  { %v449_v33 = vsel %vm236_vm4, %v446_v32, %v437_v31  ;;  %v685_v31 = vrot.slane %v2732_v24, %v3666_v55  ;;  %v659_v38 = vrot.slane %v648_v30, %v3669_v58 }
 0x32c   :  { %2982 = vmatmul.mubr.msk.f32.vlgmr.msra.gmra.mrb[4].mxu1 %vm104_vm1, %v449_v33 }
 0x32d   :  { %2985 = vmatpush3.msk.msra.mxu1 %vm314_vm5, %v3646_v46  ;;  %2986 = vmatprep.mubr.msk.f32.mxu1 %vm3393_vm3, %v3394_v14  ;;  %v696_v39 = vrot.slane %v685_v31, %v3669_v58 }
 0x32e   :  { %3193 = vmatprep.subr.bf16.mxu1 %v3391_v3 }
 0x3ff   :  { %v518_v34 = vpop.f32.mrb[4].mxu1 }
 0x400   :  { %v519_v35 = vadd.f32 1e-05, %v518_v34  ;;  %v2983_v36 = vpop.f32.mrb[5].mxu1  ;;  %v655_v34 = vrot.slane %v641_v25, %v3666_v55 }
 0x402   :  { %3378 = vrsqrt.f32 %v519_v35  ;;  %v692_v35 = vrot.slane %v678_v27, %v3666_v55 }
 0x404   :  { %v700_v44 = vrot.slane %v692_v35, %v3669_v58 }
 0x40c   :  { %v3379_v37 = vpop.eup %3378 }
 0x40d   :  { %2987 = vmatmul.mubr.msk.f32.vlgmr.msra.gmra.mrb[6].mxu1 %vm310_vm6, %v3379_v37 }
 0x40e   :  { %3195 = vmatpush1.bf16.msra.mxu1 %v3194_v41 }
 0x40f   :  { %3196 = vmatprep.subr.bf16.mxu1 %v3391_v3 }
 0x412   :  { %3198 = vmatpush1.bf16.msra.mxu1 %v3197_v43  ;;  %v663_v43 = vrot.slane %v655_v34, %v3669_v58 }
 0x413   :  { %3199 = vmatprep.subr.bf16.mxu1 %v3391_v3 }
 0x416   :  { %3201 = vmatpush1.bf16.msra.mxu1 %v3200_v47 }
 0x417   :  { %3202 = vmatprep.subr.bf16.mxu1 %v3391_v3 }
 0x41a   :  { %3204 = vmatpush1.bf16.msra.mxu1 %v3203_v50 }
 0x41b   :  { %3205 = vmatprep.subr.bf16.mxu1 %v3391_v3 }
 0x41e   :  { %3207 = vmatpush1.bf16.msra.mxu1 %v3206_v53 }
 0x41f   :  { %3208 = vmatprep.subr.bf16.mxu1 %v3391_v3 }
 0x422   :  { %3210 = vmatpush1.bf16.msra.mxu1 %v3209_v57 }
 0x423   :  { %3211 = vmatprep.subr.bf16.mxu1 %v3391_v3 }
 0x426   :  { %3213 = vmatpush1.bf16.msra.mxu1 %v3212_v61 }
 0x427   :  { %3214 = vmatprep.subr.bf16.mxu1 %v3391_v3 }
 0x42a   :  { %3216 = vmatpush1.bf16.msra.mxu1 %v3215_v0 }
 0x42b   :  { %3217 = vmatprep.subr.bf16.mxu1 %v3391_v3 }
 0x42e   :  { %3219 = vmatpush1.bf16.msra.mxu1 %v3218_v11 }
 0x42f   :  { %3220 = vmatprep.subr.bf16.mxu1 %v3391_v3 }
 0x432   :  { %3222 = vmatpush1.bf16.msra.mxu1 %v3221_v16 }
 0x433   :  { %3223 = vmatprep.subr.bf16.mxu1 %v3391_v3 }
 0x436   :  { %3225 = vmatpush1.bf16.msra.mxu1 %v3224_v19 }
 0x437   :  { %3226 = vmatprep.subr.bf16.mxu1 %v3391_v3 }
 0x43a   :  { %3228 = vmatpush1.bf16.msra.mxu1 %v3227_v22 }
 0x43b   :  { %3289 = vmatprep.subr.bf16.mxu1 %v3391_v3 }
 0x4e0   :  { %v592_v26 = vpop.f32.mrb[6].mxu1 }
 0x4e1   :  { %v603_v28 = vrot.slane %v592_v26, %v3666_v55  ;;  %v2988_v29 = vpop.f32.mrb[7].mxu1 }
 0x4e3   :  { %v604_v32 = vcombine.high %v603_v28, %v603_v28  ;;  %v611_v33 = vrot.slane %v603_v28, %v3666_v55  ;;  %v2762_v28 = vld [vmem:[%s4341_s2 + $0x1] ss:$0 sm:$0xff] }
 0x4e5   :  { %v618_v36 = vrot.slane %v604_v32, %v3666_v55  ;;  %v622_v37 = vrot.slane %v611_v33, %v3669_v58 }
 0x4e7   :  { %v626_v40 = vrot.slane %v618_v36, %v3669_v58  ;;  %v629_v41 = vmul.f32 %v622_v37, %v3676_v1  ;;  %v630_v42 = vmul.f32 %v622_v37, %v3679_v2 }
 0x4e9   :  { %v667_v45 = vmul.f32 %v659_v38, %v630_v42  ;;  %v666_v47 = vmul.f32 %v659_v38, %v629_v41  ;;  %v632_v48 = vmul.f32 %v626_v40, %v3683_v6  ;;  %v631_v49 = vmul.f32 %v626_v40, %v3681_v5 }
 0x4eb   :  { %v704_v50 = vadd.f32 %v696_v39, %v667_v45  ;;  %v703_v51 = vadd.f32 %v696_v39, %v666_v47  ;;  %v669_v52 = vmul.f32 %v663_v43, %v632_v48  ;;  %v668_v53 = vmul.f32 %v663_v43, %v631_v49 }
 0x4ed   :  { %v708_v54 = vmax.f32 %v704_v50, 0.0  ;;  %v707_v56 = vmax.f32 %v703_v51, 0.0  ;;  %v706_v57 = vadd.f32 %v700_v44, %v669_v52  ;;  %v705_v1 = vadd.f32 %v700_v44, %v668_v53 }
 0x4ef   :  { %766 = vrot.lane.b32.xlu1 %v708_v54, %s3392_s30  ;;  %764 = vrot.lane.b32.xlu0 %v707_v56, %s3392_s30  ;;  %v754_v2 = vrot.slane %v707_v56, 1  ;;  %v755_v59 = vrot.slane %v708_v54, 1  ;;  %v710_v60 = vmax.f32 %v706_v57, 0.0  ;;  %v709_v61 = vmax.f32 %v705_v1, 0.0 }
 0x4f0   :  { %v742_v62 = vrot.slane %v707_v56, 7  ;;  %v743_v6 = vrot.slane %v708_v54, 7 }
 0x4f1   :  { %v756_v5 = vsel %vm81_vm0, %v754_v2, %v755_v59  ;;  %v757_v63 = vrot.slane %v709_v61, 1  ;;  %v758_v0 = vrot.slane %v710_v60, 1  ;;  %v745_v9 = vrot.slane %v709_v61, 7 }
 0x4f2   :  { %2758 = vmatprep.mubr.msk.f32.mxu1 %vm104_vm1, %v756_v5  ;;  %v744_v8 = vsel %vm68_vm2, %v742_v62, %v743_v6  ;;  %v746_v11 = vrot.slane %v710_v60, 7  ;;  %v752_v17 = vsel %vm68_vm2, 0.0, %v742_v62  ;;  %v762_v20 = vsel %vm81_vm0, %v755_v59, 0.0 }
 0x4f3   :  { %770 = vrot.lane.b32.xlu1 %v710_v60, %s3392_s30  ;;  %768 = vrot.lane.b32.xlu0 %v709_v61, %s3392_s30  ;;  %v759_v12 = vsel %vm81_vm0, %v757_v63, %v758_v0  ;;  %v753_v23 = vsel %vm68_vm2, 0.0, %v745_v9  ;;  %v763_v26 = vsel %vm81_vm0, %v758_v0, 0.0 }
 0x4f4   :  { %v747_v15 = vsel %vm68_vm2, %v745_v9, %v746_v11 }
 0x561   :  { %v765_v16 = vpop.permute.xlu0 %764  ;;  %v767_v19 = vpop.permute.xlu1 %766 }
 0x562   :  { %v776_v18 = vsel %vm104_vm1, %v752_v17, %v765_v16  ;;  %v777_v21 = vsel %vm104_vm1, %v744_v8, %v767_v19 }
 0x563   :  { %855 = vmatmul.mubr.f32.vlgmr.msra.gmra.mrb[8].mxu1 %v776_v18 }
 0x564   :  { %2759 = vmatprep.mubr.msk.f32.mxu1 %vm104_vm1, %v762_v20  ;;  %3291 = vmatpush3.bf16.msra.mxu1 %v3584_v4 }
 0x565   :  { %3292 = vmatprep.subr.bf16.mxu1 %v3391_v3  ;;  %v769_v22 = vpop.permute.xlu0 %768  ;;  %v771_v25 = vpop.permute.xlu1 %770 }
 0x566   :  { %v778_v24 = vsel %vm104_vm1, %v753_v23, %v769_v22  ;;  %v779_v27 = vsel %vm104_vm1, %v747_v15, %v771_v25 }
 0x567   :  { %860 = vmatmul.mubr.f32.gmra.mrb[10].mxu1 %v777_v21 }
 0x568   :  { %2760 = vmatprep.mubr.msk.f32.mxu1 %vm104_vm1, %v759_v12  ;;  %3294 = vmatpush3.bf16.msra.mxu1 %v3596_v7 }
 0x569   :  { %3295 = vmatprep.subr.bf16.mxu1 %v3391_v3 }
 0x56b   :  { %865 = vmatmul.mubr.f32.gmra.mrb[12].mxu1 %v778_v24 }
 0x56c   :  { %2761 = vmatprep.mubr.msk.f32.mxu1 %vm104_vm1, %v763_v26  ;;  %3297 = vmatpush3.bf16.msra.mxu1 %v3608_v10 }
 0x56d   :  { %3298 = vmatprep.subr.bf16.mxu1 %v3391_v3 }
 0x56f   :  { %870 = vmatmul.mubr.f32.gmra.mrb[14].mxu1 %v779_v27 }
 0x570   :  { %3300 = vmatpush3.bf16.msra.mxu1 %v3620_v13  ;;  %3053 = vmatprep.mubr.msk.f32.mxu1 %vm3393_vm3, %v3394_v14 }
 0x571   :  { %3056 = vmatprep.subr.mxu1 %v3394_v14 }
 0x636   :  { %v856_v29 = vpop.f32.mrb[8].mxu1 }
 0x637   :  { %v858_v30 = vpop.f32.mrb[9].mxu1  ;;  %v881_v31 = vadd.f32 %v2762_v28, %v856_v29 }
 0x639   :  { %v889_v35 = vsel %vm104_vm1, %v881_v31, 0.0 }
 0x63a   :  { %v861_v32 = vpop.f32.mrb[10].mxu1 }
 0x63b   :  { %v882_v33 = vadd.f32 %v2762_v28, %v861_v32  ;;  %v863_v34 = vpop.f32.mrb[11].mxu1 }
 0x63d   :  { %v890_v36 = vsel %vm104_vm1, %v882_v33, 0.0 }
 0x63e   :  { %v891_v37 = vadd.f32 %v890_v36, %v889_v35  ;;  %v866_v38 = vpop.f32.mrb[12].mxu1 }
 0x63f   :  { %v868_v39 = vpop.f32.mrb[13].mxu1  ;;  %v883_v41 = vadd.f32 %v2762_v28, %v866_v38 }
 0x640   :  { %v892_v40 = vrot.slane %v891_v37, 4 }
 0x641   :  { %v898_v47 = vsel %vm104_vm1, %v883_v41, 0.0 }
 0x642   :  { %v893_v42 = vadd.f32 %v892_v40, %v891_v37  ;;  %v871_v43 = vpop.f32.mrb[14].mxu1 }
 0x643   :  { %v884_v44 = vadd.f32 %v2762_v28, %v871_v43  ;;  %v873_v45 = vpop.f32.mrb[15].mxu1 }
 0x644   :  { %v894_v49 = vrot.slane %v893_v42, 2 }
 0x645   :  { %v899_v48 = vsel %vm104_vm1, %v884_v44, 0.0 }
 0x646   :  { %v900_v50 = vadd.f32 %v899_v48, %v898_v47  ;;  %v895_v52 = vadd.f32 %v894_v49, %v893_v42  ;;  %v2773_v47 = vld [vmem:[%s4339_s1 + $0x180] sm:$0xff]  ;;  %v2774_v48 = vld [vmem:[%s4339_s1 + $0x188] sm:$0xff]  ;;  %v2775_v49 = vld [vmem:[%s4339_s1 + $0x190] sm:$0xff] }
 0x648   :  { %v901_v51 = vrot.slane %v900_v50, 4  ;;  %v896_v56 = vrot.slane %v895_v52, 1 }
 0x64a   :  { %v902_v53 = vadd.f32 %v901_v51, %v900_v50  ;;  %v897_v2 = vadd.f32 %v896_v56, %v895_v52  ;;  %v3254_v50 = vpack.c.bf16 %v2774_v48, %v2773_v47  ;;  %v2776_v51 = vld [vmem:[%s4339_s1 + $0x198] sm:$0xff] }
 0x64b   :  { %v3257_v52 = vpack.c.bf16 %v2776_v51, %v2775_v49 }
 0x64c   :  { %v903_v54 = vrot.slane %v902_v53, 2 }
 0x64e   :  { %v904_v57 = vadd.f32 %v903_v54, %v902_v53  ;;  %v2777_v53 = vld [vmem:[%s4339_s1 + $0x1a0] sm:$0xff]  ;;  %v2778_v54 = vld [vmem:[%s4339_s1 + $0x1a8] sm:$0xff] }
 0x64f   :  { %v3260_v56 = vpack.c.bf16 %v2778_v54, %v2777_v53 }
 0x650   :  { %v905_v1 = vrot.slane %v904_v57, 1 }
 0x652   :  { %v906_v59 = vadd.f32 %v905_v1, %v904_v57  ;;  %v2779_v57 = vld [vmem:[%s4339_s1 + $0x1b0] sm:$0xff]  ;;  %v2780_v1 = vld [vmem:[%s4339_s1 + $0x1b8] sm:$0xff] }
 0x654   :  { %v909_v60 = vsel %vm236_vm4, %v906_v59, %v897_v2  ;;  %v3263_v2 = vpack.c.bf16 %v2780_v1, %v2779_v57  ;;  %v2781_v59 = vld [vmem:[%s4339_s1 + $0x1c0] sm:$0xff] }
 0x655   :  { %3006 = vmatmul.mubr.msk.f32.vlgmr.msra.gmra.mrb[8].mxu0 %vm104_vm1, %v909_v60  ;;  %v2782_v60 = vld [vmem:[%s4339_s1 + $0x1c8] sm:$0xff] }
 0x656   :  { %3009 = vmatpush3.msk.msra.mxu0 %vm314_vm5, %v3646_v46  ;;  %3010 = vmatprep.mubr.msk.f32.mxu0 %vm3393_vm3, %v3394_v14 }
 0x657   :  { %3241 = vmatprep.subr.bf16.mxu0 %v3391_v3 }
 0x728   :  { %v978_v61 = vpop.f32.mrb[8].mxu0 }
 0x729   :  { %v3007_v62 = vpop.f32.mrb[9].mxu0  ;;  %3011 = vmatmul.mubr.msk.f32.vlgmr.msra.gmra.mrb[10].mxu0 %vm310_vm6, %v978_v61  ;;  %v3266_v61 = vpack.c.bf16 %v2782_v60, %v2781_v59 }
 0x72a   :  { %3243 = vmatpush3.bf16.msra.mxu0 %v3584_v4  ;;  %3029 = vmatprep.mubr.msk.f32.mxu0 %vm3393_vm3, %v3394_v14  ;;  %v2783_v62 = vld [vmem:[%s4339_s1 + $0x1d0] sm:$0xff] }
 0x72b   :  { %3244 = vmatprep.subr.bf16.mxu0 %v3391_v3 }
 0x72e   :  { %3246 = vmatpush3.bf16.msra.mxu0 %v3596_v7 }
 0x72f   :  { %3247 = vmatprep.subr.bf16.mxu0 %v3391_v3 }
 0x732   :  { %3249 = vmatpush3.bf16.msra.mxu0 %v3608_v10 }
 0x733   :  { %3250 = vmatprep.subr.bf16.mxu0 %v3391_v3 }
 0x736   :  { %3252 = vmatpush3.bf16.msra.mxu0 %v3620_v13 }
 0x737   :  { %3032 = vmatprep.subr.mxu0 %v3394_v14 }
 0x7fc   :  { %v1051_v6 = vpop.f32.mrb[10].mxu0 }
 0x7fd   :  { %v1062_v5 = vrot.slane %v1051_v6, %v3666_v55  ;;  %v3012_v63 = vpop.f32.mrb[11].mxu0  ;;  %v2784_v6 = vld [vmem:[%s4339_s1 + $0x1d8] sm:$0xff] }
 0x7fe   :  { %v2785_v63 = vld [vmem:[%s4339_s1 + $0x1e0] sm:$0xff] }
 0x7ff   :  { %v1063_v0 = vcombine.high %v1062_v5, %v1062_v5  ;;  %v1070_v8 = vrot.slane %v1062_v5, %v3666_v55  ;;  %v3269_v5 = vpack.c.bf16 %v2784_v6, %v2783_v62 }
 0x801   :  { %v1077_v9 = vrot.slane %v1063_v0, %v3666_v55  ;;  %v1081_v11 = vrot.slane %v1070_v8, %v3669_v58  ;;  %v2786_v0 = vld [vmem:[%s4339_s1 + $0x1e8] sm:$0xff] }
 0x802   :  { %v3272_v8 = vpack.c.bf16 %v2786_v0, %v2785_v63 }
 0x803   :  { %v1085_v12 = vrot.slane %v1077_v9, %v3669_v58  ;;  %v3872_v15 = vsub.f32 %v881_v31, %v1081_v11  ;;  %v3874_v16 = vsub.f32 %v882_v33, %v1081_v11  ;;  %v2787_v9 = vld [vmem:[%s4339_s1 + $0x1f0] sm:$0xff]  ;;  %v2788_v11 = vld [vmem:[%s4339_s1 + $0x1f8] sm:$0xff] }
 0x805   :  { %v3876_v17 = vsub.f32 %v883_v41, %v1085_v12  ;;  %v3878_v18 = vsub.f32 %v884_v44, %v1085_v12  ;;  %v1092_v19 = vmul.f32 %v3872_v15, %v3872_v15  ;;  %v1093_v20 = vmul.f32 %v3874_v16, %v3874_v16 }
 0x806   :  { %v3275_v12 = vpack.c.bf16 %v2788_v11, %v2787_v9  ;;  %v3389_v11 = vld [vmem:[%s4338_s0 + $0x10] sm:$0xff] }
 0x807   :  { %v1094_v21 = vmul.f32 %v3876_v17, %v3876_v17  ;;  %v1095_v22 = vmul.f32 %v3878_v18, %v3878_v18  ;;  %v1096_v23 = vsel %vm104_vm1, %v1092_v19, 0.0  ;;  %v1097_v24 = vsel %vm104_vm1, %v1093_v20, 0.0  ;;  %v2789_v19 = vld [vmem:[%s4339_s1 + $0x200] sm:$0xff]  ;;  %v2790_v20 = vld [vmem:[%s4339_s1 + $0x208] sm:$0xff] }
 0x808   :  { %v1098_v25 = vadd.f32 %v1097_v24, %v1096_v23  ;;  %v2792_v23 = vld [vmem:[%s4339_s1 + $0x218] sm:$0xff] }
 0x809   :  { %v1105_v26 = vsel %vm104_vm1, %v1094_v21, 0.0  ;;  %v1106_v27 = vsel %vm104_vm1, %v1095_v22, 0.0  ;;  %v3278_v21 = vpack.c.bf16 %v2790_v20, %v2789_v19  ;;  %v2791_v22 = vld [vmem:[%s4339_s1 + $0x210] sm:$0xff] }
 0x80a   :  { %v1099_v28 = vrot.slane %v1098_v25, 4  ;;  %v1107_v29 = vadd.f32 %v1106_v27, %v1105_v26  ;;  %v3281_v24 = vpack.c.bf16 %v2792_v23, %v2791_v22  ;;  %v2794_v26 = vld [vmem:[%s4339_s1 + $0x228] sm:$0xff] }
 0x80c   :  { %v1100_v30 = vadd.f32 %v1099_v28, %v1098_v25  ;;  %v1108_v31 = vrot.slane %v1107_v29, 4  ;;  %v2793_v25 = vld [vmem:[%s4339_s1 + $0x220] sm:$0xff]  ;;  %v2795_v28 = vld [vmem:[%s4339_s1 + $0x230] sm:$0xff] }
 0x80d   :  { %v3284_v27 = vpack.c.bf16 %v2794_v26, %v2793_v25 }
 0x80e   :  { %v1101_v32 = vrot.slane %v1100_v30, 2  ;;  %v1109_v33 = vadd.f32 %v1108_v31, %v1107_v29  ;;  %v2796_v29 = vld [vmem:[%s4339_s1 + $0x238] sm:$0xff]  ;;  %v2771_v31 = vld.sshfl [vmem:[%s4343_s3 + $0x2] sm:$0x11 pattern:$0x75316420] }
 0x810   :  { %v1102_v34 = vadd.f32 %v1101_v32, %v1100_v30  ;;  %v1110_v35 = vrot.slane %v1109_v33, 2  ;;  %v3287_v30 = vpack.c.bf16 %v2796_v29, %v2795_v28  ;;  %v2772_v32 = vld.sshfl [vmem:[%s4344_s4 + $0x2] sm:$0x11 pattern:$0x75316420] }
 0x812   :  { %v1103_v36 = vrot.slane %v1102_v34, 1  ;;  %v1111_v37 = vadd.f32 %v1110_v35, %v1109_v33  ;;  %v1308_v33 = vcombine.high %v2771_v31, %v2771_v31  ;;  %v1345_v35 = vcombine.high %v2772_v32, %v2772_v32 }
 0x814   :  { %v1112_v38 = vrot.slane %v1111_v37, 1  ;;  %v1104_v39 = vadd.f32 %v1103_v36, %v1102_v34 }
 0x816   :  { %v1113_v40 = vadd.f32 %v1112_v38, %v1111_v37  ;;  %v1315_v37 = vrot.slane %v2771_v31, %v3666_v55 }
 0x818   :  { %v1116_v41 = vsel %vm236_vm4, %v1113_v40, %v1104_v39  ;;  %v1322_v39 = vrot.slane %v1308_v33, %v3666_v55  ;;  %v1326_v47 = vrot.slane %v1315_v37, %v3669_v58 }
 0x819   :  { %3030 = vmatmul.mubr.msk.f32.vlgmr.msra.gmra.mrb[12].mxu0 %vm104_vm1, %v1116_v41 }
 0x81a   :  { %3033 = vmatpush3.msk.msra.mxu0 %vm314_vm5, %v3646_v46  ;;  %3034 = vmatprep.mubr.msk.f32.mxu0 %vm3393_vm3, %v3394_v14  ;;  %v1330_v48 = vrot.slane %v1322_v39, %v3669_v58 }
 0x81b   :  { %3253 = vmatprep.subr.bf16.mxu0 %v3391_v3 }
 0x8ec   :  { %v1185_v42 = vpop.f32.mrb[12].mxu0 }
 0x8ed   :  { %v1186_v43 = vadd.f32 1e-05, %v1185_v42  ;;  %v3031_v44 = vpop.f32.mrb[13].mxu0  ;;  %v1352_v42 = vrot.slane %v2772_v32, %v3666_v55 }
 0x8ef   :  { %3380 = vrsqrt.f32 %v1186_v43  ;;  %v1359_v43 = vrot.slane %v1345_v35, %v3666_v55 }
 0x8f1   :  { %v1367_v53 = vrot.slane %v1359_v43, %v3669_v58 }
 0x8f9   :  { %v3381_v45 = vpop.eup %3380 }
 0x8fa   :  { %3035 = vmatmul.mubr.msk.f32.vlgmr.msra.gmra.mrb[14].mxu0 %vm310_vm6, %v3381_v45 }
 0x8fb   :  { %3255 = vmatpush1.bf16.msra.mxu0 %v3254_v50 }
 0x8fc   :  { %3256 = vmatprep.subr.bf16.mxu0 %v3391_v3 }
 0x8ff   :  { %3258 = vmatpush1.bf16.msra.mxu0 %v3257_v52  ;;  %v1363_v52 = vrot.slane %v1352_v42, %v3669_v58 }
 0x900   :  { %3259 = vmatprep.subr.bf16.mxu0 %v3391_v3 }
 0x903   :  { %3261 = vmatpush1.bf16.msra.mxu0 %v3260_v56 }
 0x904   :  { %3262 = vmatprep.subr.bf16.mxu0 %v3391_v3 }
 0x907   :  { %3264 = vmatpush1.bf16.msra.mxu0 %v3263_v2 }
 0x908   :  { %3265 = vmatprep.subr.bf16.mxu0 %v3391_v3 }
 0x90b   :  { %3267 = vmatpush1.bf16.msra.mxu0 %v3266_v61 }
 0x90c   :  { %3268 = vmatprep.subr.bf16.mxu0 %v3391_v3 }
 0x90f   :  { %3270 = vmatpush1.bf16.msra.mxu0 %v3269_v5 }
 0x910   :  { %3271 = vmatprep.subr.bf16.mxu0 %v3391_v3 }
 0x913   :  { %3273 = vmatpush1.bf16.msra.mxu0 %v3272_v8  ;;  %v3388_v8 = vld [vmem:[%s4338_s0 + $0x18] sm:$0xff] }
 0x914   :  { %3274 = vmatprep.subr.bf16.mxu0 %v3391_v3 }
 0x917   :  { %3276 = vmatpush1.bf16.msra.mxu0 %v3275_v12 }
 0x918   :  { %3277 = vmatprep.subr.bf16.mxu0 %v3391_v3 }
 0x91b   :  { %3279 = vmatpush1.bf16.msra.mxu0 %v3278_v21 }
 0x91c   :  { %3280 = vmatprep.subr.bf16.mxu0 %v3391_v3 }
 0x91f   :  { %3282 = vmatpush1.bf16.msra.mxu0 %v3281_v24 }
 0x920   :  { %3283 = vmatprep.subr.bf16.mxu0 %v3391_v3 }
 0x923   :  { %3285 = vmatpush1.bf16.msra.mxu0 %v3284_v27 }
 0x924   :  { %3286 = vmatprep.subr.bf16.mxu0 %v3391_v3 }
 0x927   :  { %3288 = vmatpush1.bf16.msra.mxu0 %v3287_v30 }
 0x928   :  { %3349 = vmatprep.subr.bf16.mxu0 %v3391_v3 }
 0x9cd   :  { %v1259_v34 = vpop.f32.mrb[14].mxu0 }
 0x9ce   :  { %v1270_v36 = vrot.slane %v1259_v34, %v3666_v55  ;;  %v3036_v38 = vpop.f32.mrb[15].mxu0 }
 0x9d0   :  { %v1271_v40 = vcombine.high %v1270_v36, %v1270_v36  ;;  %v1278_v41 = vrot.slane %v1270_v36, %v3666_v55 }
 0x9d2   :  { %v1285_v44 = vrot.slane %v1271_v40, %v3666_v55  ;;  %v1289_v45 = vrot.slane %v1278_v41, %v3669_v58  ;;  %v2802_v40 = vld [vmem:[%s4341_s2 + $0x2] ss:$0 sm:$0xff] }
 0x9d4   :  { %v1293_v49 = vrot.slane %v1285_v44, %v3669_v58  ;;  %v1296_v50 = vmul.f32 %v1289_v45, %v3872_v15  ;;  %v1297_v51 = vmul.f32 %v1289_v45, %v3874_v16  ;;  %v3386_v15 = vld [vmem:[%s4338_s0 + $0x8] sm:$0xff]  ;;  %v3387_v16 = vld [vmem:[%s4338_s0] sm:$0xff] }
 0x9d6   :  { %v1298_v54 = vmul.f32 %v1293_v49, %v3876_v17  ;;  %v1299_v56 = vmul.f32 %v1293_v49, %v3878_v18  ;;  %v1333_v57 = vmul.f32 %v1326_v47, %v1296_v50  ;;  %v1334_v1 = vmul.f32 %v1326_v47, %v1297_v51 }
 0x9d8   :  { %v1335_v2 = vmul.f32 %v1330_v48, %v1298_v54  ;;  %v1336_v59 = vmul.f32 %v1330_v48, %v1299_v56  ;;  %v1371_v60 = vadd.f32 %v1363_v52, %v1334_v1  ;;  %v1370_v61 = vadd.f32 %v1363_v52, %v1333_v57 }
 0x9da   :  { %v4010_v62 = vadd.f32 %v3386_v15, %v1371_v60  ;;  %v4015_v6 = vadd.f32 %v3387_v16, %v1370_v61  ;;  %v1373_v17 = vadd.f32 %v1367_v53, %v1336_v59  ;;  %v1372_v18 = vadd.f32 %v1367_v53, %v1335_v2 }
 0x9dc   :  { %1433 = vrot.lane.b32.xlu1 %v4010_v62, %s3392_s30  ;;  %1431 = vrot.lane.b32.xlu0 %v4015_v6, %s3392_s30  ;;  %v1421_v5 = vrot.slane %v4015_v6, 1  ;;  %v1422_v63 = vrot.slane %v4010_v62, 1  ;;  %v4027_v9 = vadd.f32 %v3388_v8, %v1373_v17  ;;  %v4032_v12 = vadd.f32 %v3389_v11, %v1372_v18 }
 0x9dd   :  { %v1409_v19 = vrot.slane %v4015_v6, 7  ;;  %v1410_v22 = vrot.slane %v4010_v62, 7 }
 0x9de   :  { %v1423_v0 = vsel %vm81_vm0, %v1421_v5, %v1422_v63  ;;  %v1429_v25 = vsel %vm81_vm0, %v1422_v63, 0.0  ;;  %v1424_v26 = vrot.slane %v4032_v12, 1  ;;  %v1425_v27 = vrot.slane %v4027_v9, 1 }
 0x9df   :  { %2798 = vmatprep.mubr.msk.f32.mxu0 %vm104_vm1, %v1423_v0  ;;  %v1419_v21 = vsel %vm68_vm2, 0.0, %v1409_v19  ;;  %v1411_v28 = vsel %vm68_vm2, %v1409_v19, %v1410_v22  ;;  %v1412_v29 = vrot.slane %v4032_v12, 7  ;;  %v1413_v34 = vrot.slane %v4027_v9, 7 }
 0x9e0   :  { %1437 = vrot.lane.b32.xlu1 %v4027_v9, %s3392_s30  ;;  %1435 = vrot.lane.b32.xlu0 %v4032_v12, %s3392_s30  ;;  %v1426_v32 = vsel %vm81_vm0, %v1424_v26, %v1425_v27  ;;  %v1430_v37 = vsel %vm81_vm0, %v1425_v27, 0.0 }
 0x9e1   :  { %v1420_v33 = vsel %vm68_vm2, 0.0, %v1412_v29  ;;  %v1414_v38 = vsel %vm68_vm2, %v1412_v29, %v1413_v34 }
 0xa4e   :  { %v1432_v20 = vpop.permute.xlu0 %1431  ;;  %v1434_v24 = vpop.permute.xlu1 %1433 }
 0xa4f   :  { %v1443_v23 = vsel %vm104_vm1, %v1419_v21, %v1432_v20  ;;  %v1444_v30 = vsel %vm104_vm1, %v1411_v28, %v1434_v24 }
 0xa50   :  { %1522 = vmatmul.mubr.f32.vlgmr.msra.gmra.mrb[16].mxu0 %v1443_v23 }
 0xa51   :  { %2799 = vmatprep.mubr.msk.f32.mxu0 %vm104_vm1, %v1429_v25  ;;  %3351 = vmatpush3.bf16.msra.mxu0 %v3584_v4 }
 0xa52   :  { %3352 = vmatprep.subr.bf16.mxu0 %v3391_v3  ;;  %v1436_v31 = vpop.permute.xlu0 %1435  ;;  %v1438_v36 = vpop.permute.xlu1 %1437 }
 0xa53   :  { %v1445_v35 = vsel %vm104_vm1, %v1420_v33, %v1436_v31  ;;  %v1446_v39 = vsel %vm104_vm1, %v1414_v38, %v1438_v36 }
 0xa54   :  { %1527 = vmatmul.mubr.f32.gmra.mrb[18].mxu0 %v1444_v30 }
 0xa55   :  { %2800 = vmatprep.mubr.msk.f32.mxu0 %vm104_vm1, %v1426_v32  ;;  %3354 = vmatpush3.bf16.msra.mxu0 %v3596_v7 }
 0xa56   :  { %3355 = vmatprep.subr.bf16.mxu0 %v3391_v3 }
 0xa58   :  { %1532 = vmatmul.mubr.f32.gmra.mrb[20].mxu0 %v1445_v35 }
 0xa59   :  { %2801 = vmatprep.mubr.msk.f32.mxu0 %vm104_vm1, %v1430_v37  ;;  %3357 = vmatpush3.bf16.msra.mxu0 %v3608_v10 }
 0xa5a   :  { %3358 = vmatprep.subr.bf16.mxu0 %v3391_v3 }
 0xa5c   :  { %1537 = vmatmul.mubr.f32.gmra.mrb[22].mxu0 %v1446_v39 }
 0xa5d   :  { %3360 = vmatpush3.bf16.msra.mxu0 %v3620_v13  ;;  %3101 = vmatprep.mubr.msk.f32.mxu0 %vm3393_vm3, %v3394_v14 }
 0xa5e   :  { %3104 = vmatprep.subr.mxu0 %v3394_v14 }
 0xb23   :  { %v1523_v41 = vpop.f32.mrb[16].mxu0 }
 0xb24   :  { %v1525_v42 = vpop.f32.mrb[17].mxu0  ;;  %v1548_v43 = vadd.f32 %v2802_v40, %v1523_v41 }
 0xb26   :  { %v1556_v48 = vsel %vm104_vm1, %v1548_v43, 0.0 }
 0xb27   :  { %v1528_v44 = vpop.f32.mrb[18].mxu0 }
 0xb28   :  { %v1549_v45 = vadd.f32 %v2802_v40, %v1528_v44  ;;  %v1530_v47 = vpop.f32.mrb[19].mxu0 }
 0xb2a   :  { %v1557_v49 = vsel %vm104_vm1, %v1549_v45, 0.0 }
 0xb2b   :  { %v1558_v50 = vadd.f32 %v1557_v49, %v1556_v48  ;;  %v1533_v51 = vpop.f32.mrb[20].mxu0 }
 0xb2c   :  { %v1535_v52 = vpop.f32.mrb[21].mxu0  ;;  %v1550_v54 = vadd.f32 %v2802_v40, %v1533_v51 }
 0xb2d   :  { %v1559_v53 = vrot.slane %v1558_v50, 4 }
 0xb2e   :  { %v1565_v59 = vsel %vm104_vm1, %v1550_v54, 0.0 }
 0xb2f   :  { %v1560_v56 = vadd.f32 %v1559_v53, %v1558_v50  ;;  %v1538_v57 = vpop.f32.mrb[22].mxu0 }
 0xb30   :  { %v1551_v1 = vadd.f32 %v2802_v40, %v1538_v57  ;;  %v1540_v2 = vpop.f32.mrb[23].mxu0 }
 0xb31   :  { %v1561_v61 = vrot.slane %v1560_v56, 2  ;;  %v4124_v2 = vld [vmem:[%s4342_s6] sm:$0xf] }
 0xb32   :  { %v1566_v60 = vsel %vm104_vm1, %v1551_v1, 0.0 }
 0xb33   :  { %v1567_v15 = vadd.f32 %v1566_v60, %v1565_v59  ;;  %v1562_v17 = vadd.f32 %v1561_v61, %v1560_v56 }
 0xb35   :  { %v1568_v16 = vrot.slane %v1567_v15, 4  ;;  %v1563_v63 = vrot.slane %v1562_v17, 1 }
 0xb37   :  { %v1569_v18 = vadd.f32 %v1568_v16, %v1567_v15  ;;  %v1564_v11 = vadd.f32 %v1563_v63, %v1562_v17  ;;  %v2813_v16 = vld [vmem:[%s4339_s1 + $0x240] sm:$0xff]  ;;  %v2814_v17 = vld [vmem:[%s4339_s1 + $0x248] sm:$0xff]  ;;  %v2816_v63 = vld [vmem:[%s4339_s1 + $0x258] sm:$0xff] }
 0xb39   :  { %v1570_v5 = vrot.slane %v1569_v18, 2 }
 0xb3b   :  { %v1571_v0 = vadd.f32 %v1570_v5, %v1569_v18  ;;  %v2815_v18 = vld [vmem:[%s4339_s1 + $0x250] sm:$0xff]  ;;  %v3314_v5 = vpack.c.bf16 %v2814_v17, %v2813_v16 }
 0xb3d   :  { %v1572_v8 = vrot.slane %v1571_v0, 1 }
 0xb3f   :  { %v1573_v19 = vadd.f32 %v1572_v8, %v1571_v0  ;;  %v3317_v0 = vpack.c.bf16 %v2816_v63, %v2815_v18  ;;  %v2817_v8 = vld [vmem:[%s4339_s1 + $0x260] sm:$0xff] }
 0xb41   :  { %v1576_v20 = vsel %vm236_vm4, %v1573_v19, %v1564_v11  ;;  %v2818_v11 = vld [vmem:[%s4339_s1 + $0x268] sm:$0xff] }
 0xb42   :  { %3054 = vmatmul.mubr.msk.f32.vlgmr.msra.gmra.mrb[16].mxu1 %vm104_vm1, %v1576_v20  ;;  %v3320_v19 = vpack.c.bf16 %v2818_v11, %v2817_v8  ;;  %v2819_v20 = vld [vmem:[%s4339_s1 + $0x270] sm:$0xff] }
 0xb43   :  { %3057 = vmatpush3.msk.msra.mxu1 %vm314_vm5, %v3646_v46  ;;  %3058 = vmatprep.mubr.msk.f32.mxu1 %vm3393_vm3, %v3394_v14 }
 0xb44   :  { %3301 = vmatprep.subr.bf16.mxu1 %v3391_v3 }
 0xc15   :  { %v1645_v21 = vpop.f32.mrb[16].mxu1 }
 0xc16   :  { %v3055_v22 = vpop.f32.mrb[17].mxu1  ;;  %3059 = vmatmul.mubr.msk.f32.vlgmr.msra.gmra.mrb[18].mxu1 %vm310_vm6, %v1645_v21  ;;  %v2820_v21 = vld [vmem:[%s4339_s1 + $0x278] sm:$0xff] }
 0xc17   :  { %3303 = vmatpush3.bf16.msra.mxu1 %v3584_v4  ;;  %3077 = vmatprep.mubr.msk.f32.mxu1 %vm3393_vm3, %v3394_v14  ;;  %v3323_v22 = vpack.c.bf16 %v2820_v21, %v2819_v20 }
 0xc18   :  { %3304 = vmatprep.subr.bf16.mxu1 %v3391_v3 }
 0xc1b   :  { %3306 = vmatpush3.bf16.msra.mxu1 %v3596_v7 }
 0xc1c   :  { %3307 = vmatprep.subr.bf16.mxu1 %v3391_v3 }
 0xc1f   :  { %3309 = vmatpush3.bf16.msra.mxu1 %v3608_v10 }
 0xc20   :  { %3310 = vmatprep.subr.bf16.mxu1 %v3391_v3 }
 0xc23   :  { %3312 = vmatpush3.bf16.msra.mxu1 %v3620_v13 }
 0xc24   :  { %3080 = vmatprep.subr.mxu1 %v3394_v14 }
 0xce9   :  { %v1718_v46 = vpop.f32.mrb[18].mxu1 }
 0xcea   :  { %v1729_v23 = vrot.slane %v1718_v46, %v3666_v55  ;;  %v3060_v24 = vpop.f32.mrb[19].mxu1  ;;  %v2821_v46 = vld [vmem:[%s4339_s1 + $0x280] sm:$0xff] }
 0xcec   :  { %v1730_v25 = vcombine.high %v1729_v23, %v1729_v23  ;;  %v1737_v26 = vrot.slane %v1729_v23, %v3666_v55  ;;  %v2822_v23 = vld [vmem:[%s4339_s1 + $0x288] sm:$0xff] }
 0xced   :  { %v3326_v24 = vpack.c.bf16 %v2822_v23, %v2821_v46 }
 0xcee   :  { %v1744_v27 = vrot.slane %v1730_v25, %v3666_v55  ;;  %v1748_v28 = vrot.slane %v1737_v26, %v3669_v58  ;;  %v2823_v25 = vld [vmem:[%s4339_s1 + $0x290] sm:$0xff]  ;;  %v2824_v26 = vld [vmem:[%s4339_s1 + $0x298] sm:$0xff] }
 0xcf0   :  { %v1752_v29 = vrot.slane %v1744_v27, %v3669_v58  ;;  %v4099_v30 = vsub.f32 %v1548_v43, %v1748_v28  ;;  %v4101_v31 = vsub.f32 %v1549_v45, %v1748_v28  ;;  %v3329_v27 = vpack.c.bf16 %v2824_v26, %v2823_v25  ;;  %v2825_v28 = vld [vmem:[%s4339_s1 + $0x2a0] sm:$0xff] }
 0xcf2   :  { %v4103_v32 = vsub.f32 %v1550_v54, %v1752_v29  ;;  %v4105_v33 = vsub.f32 %v1551_v1, %v1752_v29  ;;  %v1759_v34 = vmul.f32 %v4099_v30, %v4099_v30  ;;  %v1760_v35 = vmul.f32 %v4101_v31, %v4101_v31  ;;  %v2826_v29 = vld [vmem:[%s4339_s1 + $0x2a8] sm:$0xff] }
 0xcf4   :  { %v1761_v36 = vmul.f32 %v4103_v32, %v4103_v32  ;;  %v1762_v37 = vmul.f32 %v4105_v33, %v4105_v33  ;;  %v1763_v38 = vsel %vm104_vm1, %v1759_v34, 0.0  ;;  %v1764_v39 = vsel %vm104_vm1, %v1760_v35, 0.0  ;;  %v2827_v35 = vld [vmem:[%s4339_s1 + $0x2b0] sm:$0xff] }
 0xcf5   :  { %v1765_v40 = vadd.f32 %v1764_v39, %v1763_v38  ;;  %v3332_v34 = vpack.c.bf16 %v2826_v29, %v2825_v28  ;;  %v2829_v38 = vld [vmem:[%s4339_s1 + $0x2c0] sm:$0xff]  ;;  %v2830_v39 = vld [vmem:[%s4339_s1 + $0x2c8] sm:$0xff] }
 0xcf6   :  { %v1772_v41 = vsel %vm104_vm1, %v1761_v36, 0.0  ;;  %v1773_v42 = vsel %vm104_vm1, %v1762_v37, 0.0  ;;  %v2828_v36 = vld [vmem:[%s4339_s1 + $0x2b8] sm:$0xff] }
 0xcf7   :  { %v1766_v43 = vrot.slane %v1765_v40, 4  ;;  %v1774_v44 = vadd.f32 %v1773_v42, %v1772_v41  ;;  %v3335_v37 = vpack.c.bf16 %v2828_v36, %v2827_v35  ;;  %v2831_v41 = vld [vmem:[%s4339_s1 + $0x2d0] sm:$0xff]  ;;  %v2832_v42 = vld [vmem:[%s4339_s1 + $0x2d8] sm:$0xff] }
 0xcf9   :  { %v1767_v45 = vadd.f32 %v1766_v43, %v1765_v40  ;;  %v1775_v47 = vrot.slane %v1774_v44, 4  ;;  %v3338_v40 = vpack.c.bf16 %v2830_v39, %v2829_v38  ;;  %v3341_v43 = vpack.c.bf16 %v2832_v42, %v2831_v41 }
 0xcfb   :  { %v1768_v48 = vrot.slane %v1767_v45, 2  ;;  %v1776_v49 = vadd.f32 %v1775_v47, %v1774_v44  ;;  %v2833_v44 = vld [vmem:[%s4339_s1 + $0x2e0] sm:$0xff] }
 0xcfd   :  { %v1769_v50 = vadd.f32 %v1768_v48, %v1767_v45  ;;  %v1777_v51 = vrot.slane %v1776_v49, 2  ;;  %v2834_v45 = vld [vmem:[%s4339_s1 + $0x2e8] sm:$0xff]  ;;  %v2835_v48 = vld [vmem:[%s4339_s1 + $0x2f0] sm:$0xff] }
 0xcfe   :  { %v3344_v47 = vpack.c.bf16 %v2834_v45, %v2833_v44 }
 0xcff   :  { %v1770_v52 = vrot.slane %v1769_v50, 1  ;;  %v1778_v53 = vadd.f32 %v1777_v51, %v1776_v49  ;;  %v2836_v49 = vld [vmem:[%s4339_s1 + $0x2f8] sm:$0xff]  ;;  %v2811_v51 = vld.sshfl [vmem:[%s4343_s3 + $0x4] sm:$0x11 pattern:$0x75316420] }
 0xd01   :  { %v1779_v54 = vrot.slane %v1778_v53, 1  ;;  %v1771_v56 = vadd.f32 %v1770_v52, %v1769_v50  ;;  %v3347_v50 = vpack.c.bf16 %v2836_v49, %v2835_v48  ;;  %v2812_v52 = vld.sshfl [vmem:[%s4344_s4 + $0x4] sm:$0x11 pattern:$0x75316420] }
 0xd03   :  { %v1780_v57 = vadd.f32 %v1779_v54, %v1778_v53  ;;  %v1975_v53 = vcombine.high %v2811_v51, %v2811_v51 }
 0xd05   :  { %v1783_v1 = vsel %vm236_vm4, %v1780_v57, %v1771_v56  ;;  %v2012_v56 = vcombine.high %v2812_v52, %v2812_v52  ;;  %v1989_v16 = vrot.slane %v1975_v53, %v3666_v55 }
 0xd06   :  { %3078 = vmatmul.mubr.msk.f32.vlgmr.msra.gmra.mrb[20].mxu1 %vm104_vm1, %v1783_v1 }
 0xd07   :  { %3081 = vmatpush3.msk.msra.mxu1 %vm314_vm5, %v4124_v2  ;;  %3082 = vmatprep.mubr.msk.f32.mxu1 %vm3393_vm3, %v3394_v14  ;;  %v2026_v17 = vrot.slane %v2012_v56, %v3666_v55  ;;  %v1997_v20 = vrot.slane %v1989_v16, %v3669_v58 }
 0xd08   :  { %3313 = vmatprep.subr.bf16.mxu1 %v3391_v3 }
 0xd09   :  { %v2034_v21 = vrot.slane %v2026_v17, %v3669_v58 }
 0xdd9   :  { %v1852_v59 = vpop.f32.mrb[20].mxu1 }
 0xdda   :  { %v1853_v60 = vadd.f32 1e-05, %v1852_v59  ;;  %v3079_v61 = vpop.f32.mrb[21].mxu1  ;;  %v1982_v59 = vrot.slane %v2811_v51, %v3666_v55 }
 0xddc   :  { %3382 = vrsqrt.f32 %v1853_v60  ;;  %v2019_v60 = vrot.slane %v2812_v52, %v3666_v55  ;;  %v1993_v63 = vrot.slane %v1982_v59, %v3669_v58 }
 0xde6   :  { %v3383_v15 = vpop.eup %3382 }
 0xde7   :  { %3083 = vmatmul.mubr.msk.f32.vlgmr.msra.gmra.mrb[22].mxu1 %vm310_vm6, %v3383_v15 }
 0xde8   :  { %3315 = vmatpush1.bf16.msra.mxu1 %v3314_v5 }
 0xde9   :  { %3316 = vmatprep.subr.bf16.mxu1 %v3391_v3 }
 0xdec   :  { %3318 = vmatpush1.bf16.msra.mxu1 %v3317_v0  ;;  %v2030_v0 = vrot.slane %v2019_v60, %v3669_v58 }
 0xded   :  { %3319 = vmatprep.subr.bf16.mxu1 %v3391_v3 }
 0xdf0   :  { %3321 = vmatpush1.bf16.msra.mxu1 %v3320_v19 }
 0xdf1   :  { %3322 = vmatprep.subr.bf16.mxu1 %v3391_v3 }
 0xdf4   :  { %3324 = vmatpush1.bf16.msra.mxu1 %v3323_v22 }
 0xdf5   :  { %3325 = vmatprep.subr.bf16.mxu1 %v3391_v3 }
 0xdf8   :  { %3327 = vmatpush1.bf16.msra.mxu1 %v3326_v24 }
 0xdf9   :  { %3328 = vmatprep.subr.bf16.mxu1 %v3391_v3 }
 0xdfc   :  { %3330 = vmatpush1.bf16.msra.mxu1 %v3329_v27 }
 0xdfd   :  { %3331 = vmatprep.subr.bf16.mxu1 %v3391_v3 }
 0xe00   :  { %3333 = vmatpush1.bf16.msra.mxu1 %v3332_v34 }
 0xe01   :  { %3334 = vmatprep.subr.bf16.mxu1 %v3391_v3 }
 0xe04   :  { %3336 = vmatpush1.bf16.msra.mxu1 %v3335_v37 }
 0xe05   :  { %3337 = vmatprep.subr.bf16.mxu1 %v3391_v3 }
 0xe08   :  { %3339 = vmatpush1.bf16.msra.mxu1 %v3338_v40 }
 0xe09   :  { %3340 = vmatprep.subr.bf16.mxu1 %v3391_v3 }
 0xe0c   :  { %3342 = vmatpush1.bf16.msra.mxu1 %v3341_v43 }
 0xe0d   :  { %3343 = vmatprep.subr.bf16.mxu1 %v3391_v3 }
 0xe10   :  { %3345 = vmatpush1.bf16.msra.mxu1 %v3344_v47 }
 0xe11   :  { %3346 = vmatprep.subr.bf16.mxu1 %v3391_v3 }
 0xe14   :  { %3348 = vmatpush1.bf16.msra.mxu1 %v3347_v50 }
 0xeba   :  { %v1926_v54 = vpop.f32.mrb[22].mxu1 }
 0xebb   :  { %v1937_v57 = vrot.slane %v1926_v54, %v3666_v55  ;;  %v3084_v1 = vpop.f32.mrb[23].mxu1 }
 0xebd   :  { %v1938_v61 = vcombine.high %v1937_v57, %v1937_v57  ;;  %v1945_v15 = vrot.slane %v1937_v57, %v3666_v55 }
 0xebf   :  { %v1952_v18 = vrot.slane %v1938_v61, %v3666_v55  ;;  %v1956_v5 = vrot.slane %v1945_v15, %v3669_v58  ;;  %v2842_v61 = vld [vmem:[%s4341_s2 + $0x3] ss:$0 sm:$0xff] }
 0xec1   :  { %v1960_v8 = vrot.slane %v1952_v18, %v3669_v58  ;;  %v1963_v11 = vmul.f32 %v1956_v5, %v4099_v30  ;;  %v1964_v19 = vmul.f32 %v1956_v5, %v4101_v31 }
 0xec3   :  { %v2001_v22 = vmul.f32 %v1993_v63, %v1964_v19  ;;  %v2000_v46 = vmul.f32 %v1993_v63, %v1963_v11  ;;  %v1966_v23 = vmul.f32 %v1960_v8, %v4105_v33  ;;  %v1965_v24 = vmul.f32 %v1960_v8, %v4103_v32 }
 0xec5   :  { %v2038_v25 = vadd.f32 %v2030_v0, %v2001_v22  ;;  %v2037_v26 = vadd.f32 %v2030_v0, %v2000_v46  ;;  %v2003_v27 = vmul.f32 %v1997_v20, %v1966_v23  ;;  %v2002_v28 = vmul.f32 %v1997_v20, %v1965_v24 }
 0xec7   :  { %v2042_v29 = vmax.f32 %v2038_v25, 0.0  ;;  %v2041_v34 = vmax.f32 %v2037_v26, 0.0  ;;  %v2040_v35 = vadd.f32 %v2034_v21, %v2003_v27  ;;  %v2039_v30 = vadd.f32 %v2034_v21, %v2002_v28 }
 0xec9   :  { %2100 = vrot.lane.b32.xlu1 %v2042_v29, %s3392_s30  ;;  %2098 = vrot.lane.b32.xlu0 %v2041_v34, %s3392_s30  ;;  %v2088_v31 = vrot.slane %v2041_v34, 1  ;;  %v2089_v36 = vrot.slane %v2042_v29, 1  ;;  %v2044_v37 = vmax.f32 %v2040_v35, 0.0  ;;  %v2043_v38 = vmax.f32 %v2039_v30, 0.0 }
 0xeca   :  { %v2076_v39 = vrot.slane %v2041_v34, 7  ;;  %v2077_v33 = vrot.slane %v2042_v29, 7 }
 0xecb   :  { %v2090_v32 = vsel %vm81_vm0, %v2088_v31, %v2089_v36  ;;  %v2091_v40 = vrot.slane %v2043_v38, 1  ;;  %v2092_v41 = vrot.slane %v2044_v37, 1  ;;  %v2079_v43 = vrot.slane %v2043_v38, 7 }
 0xecc   :  { %2838 = vmatprep.mubr.msk.f32.mxu1 %vm104_vm1, %v2090_v32  ;;  %v2078_v42 = vsel %vm68_vm2, %v2076_v39, %v2077_v33  ;;  %v2080_v44 = vrot.slane %v2044_v37, 7  ;;  %v2086_v49 = vsel %vm68_vm2, 0.0, %v2076_v39  ;;  %v2096_v52 = vsel %vm81_vm0, %v2089_v36, 0.0 }
 0xecd   :  { %2104 = vrot.lane.b32.xlu1 %v2044_v37, %s3392_s30  ;;  %2102 = vrot.lane.b32.xlu0 %v2043_v38, %s3392_s30  ;;  %v2093_v45 = vsel %vm81_vm0, %v2091_v40, %v2092_v41  ;;  %v2087_v56 = vsel %vm68_vm2, 0.0, %v2079_v43  ;;  %v2097_v59 = vsel %vm81_vm0, %v2092_v41, 0.0 }
 0xece   :  { %v2081_v47 = vsel %vm68_vm2, %v2079_v43, %v2080_v44 }
 0xf3b   :  { %v2099_v48 = vpop.permute.xlu0 %2098  ;;  %v2101_v51 = vpop.permute.xlu1 %2100 }
 0xf3c   :  { %v2110_v50 = vsel %vm104_vm1, %v2086_v49, %v2099_v48  ;;  %v2111_v53 = vsel %vm104_vm1, %v2078_v42, %v2101_v51 }
 0xf3d   :  { %2189 = vmatmul.mubr.f32.vlgmr.msra.gmra.mrb[24].mxu1 %v2110_v50 }
 0xf3e   :  { %2839 = vmatprep.mubr.msk.f32.mxu1 %vm104_vm1, %v2096_v52 }
 0xf3f   :  { %v2103_v54 = vpop.permute.xlu0 %2102  ;;  %v2105_v1 = vpop.permute.xlu1 %2104 }
 0xf40   :  { %v2112_v57 = vsel %vm104_vm1, %v2087_v56, %v2103_v54  ;;  %v2113_v60 = vsel %vm104_vm1, %v2081_v47, %v2105_v1 }
 0xf41   :  { %2194 = vmatmul.mubr.f32.gmra.mrb[26].mxu1 %v2111_v53 }
 0xf42   :  { %2840 = vmatprep.mubr.msk.f32.mxu1 %vm104_vm1, %v2093_v45 }
 0xf45   :  { %2199 = vmatmul.mubr.f32.gmra.mrb[28].mxu1 %v2112_v57 }
 0xf46   :  { %2841 = vmatprep.mubr.msk.f32.mxu1 %vm104_vm1, %v2097_v59 }
 0xf49   :  { %2204 = vmatmul.mubr.f32.gmra.mrb[30].mxu1 %v2113_v60 }
0x1010   :  { %v2190_v15 = vpop.f32.mrb[24].mxu1 }
0x1011   :  { %v2192_v16 = vpop.f32.mrb[25].mxu1  ;;  %v2215_v17 = vadd.f32 %v2842_v61, %v2190_v15 }
0x1013   :  { %v2223_v0 = vsel %vm104_vm1, %v2215_v17, 0.0 }
0x1014   :  { %v2195_v18 = vpop.f32.mrb[26].mxu1 }
0x1015   :  { %v2216_v5 = vadd.f32 %v2842_v61, %v2195_v18  ;;  %v2197_v63 = vpop.f32.mrb[27].mxu1 }
0x1017   :  { %v2224_v8 = vsel %vm104_vm1, %v2216_v5, 0.0 }
0x1018   :  { %v2225_v11 = vadd.f32 %v2224_v8, %v2223_v0  ;;  %v2200_v19 = vpop.f32.mrb[28].mxu1 }
0x1019   :  { %v2202_v20 = vpop.f32.mrb[29].mxu1  ;;  %v2217_v22 = vadd.f32 %v2842_v61, %v2200_v19 }
0x101a   :  { %v2226_v21 = vrot.slane %v2225_v11, 4 }
0x101b   :  { %v2232_v26 = vsel %vm104_vm1, %v2217_v22, 0.0 }
0x101c   :  { %v2227_v46 = vadd.f32 %v2226_v21, %v2225_v11  ;;  %v2205_v23 = vpop.f32.mrb[30].mxu1 }
0x101d   :  { %v2218_v24 = vadd.f32 %v2842_v61, %v2205_v23  ;;  %v2207_v25 = vpop.f32.mrb[31].mxu1 }
0x101e   :  { %v2228_v28 = vrot.slane %v2227_v46, 2  ;;  %v2851_v25 = vld.sshfl [vmem:[%s4343_s3 + $0x6] sm:$0x11 pattern:$0x75316420] }
0x101f   :  { %v2233_v27 = vsel %vm104_vm1, %v2218_v24, 0.0 }
0x1020   :  { %v2234_v29 = vadd.f32 %v2233_v27, %v2232_v26  ;;  %v2229_v35 = vadd.f32 %v2228_v28, %v2227_v46  ;;  %v2852_v26 = vld.sshfl [vmem:[%s4344_s4 + $0x6] sm:$0x11 pattern:$0x75316420]  ;;  %v2642_v27 = vcombine.high %v2851_v25, %v2851_v25 }
0x1021   :  { %v2679_v28 = vcombine.high %v2852_v26, %v2852_v26 }
0x1022   :  { %v2235_v34 = vrot.slane %v2234_v29, 4  ;;  %v2230_v36 = vrot.slane %v2229_v35, 1 }
0x1024   :  { %v2236_v30 = vadd.f32 %v2235_v34, %v2234_v29  ;;  %v2231_v39 = vadd.f32 %v2230_v36, %v2229_v35  ;;  %v2649_v29 = vrot.slane %v2851_v25, %v3666_v55  ;;  %v2656_v35 = vrot.slane %v2642_v27, %v3666_v55 }
0x1025   :  { %v2686_v36 = vrot.slane %v2852_v26, %v3666_v55 }
0x1026   :  { %v2237_v31 = vrot.slane %v2236_v30, 2 }
0x1028   :  { %v2238_v37 = vadd.f32 %v2237_v31, %v2236_v30 }
0x102a   :  { %v2239_v38 = vrot.slane %v2238_v37, 1 }
0x102c   :  { %v2240_v33 = vadd.f32 %v2239_v38, %v2238_v37  ;;  %v2693_v37 = vrot.slane %v2679_v28, %v3666_v55 }
0x102e   :  { %v2243_v32 = vsel %vm236_vm4, %v2240_v33, %v2231_v39  ;;  %v2660_v33 = vrot.slane %v2649_v29, %v3669_v58 }
0x102f   :  { %3102 = vmatmul.mubr.msk.f32.vlgmr.msra.gmra.mrb[24].mxu0 %vm104_vm1, %v2243_v32  ;;  %v2664_v32 = vrot.slane %v2656_v35, %v3669_v58 }
0x1030   :  { %3105 = vmatpush3.msk.msra.mxu0 %vm314_vm5, %v4124_v2  ;;  %3106 = vmatprep.mubr.msk.f32.mxu0 %vm3393_vm3, %v3394_v14 }
0x1031   :  { %3361 = vmatprep.subr.bf16.mxu0 %v3391_v3 }
0x1102   :  { %v2312_v40 = vpop.f32.mrb[24].mxu0 }
0x1103   :  { %v3103_v41 = vpop.f32.mrb[25].mxu0  ;;  %3107 = vmatmul.mubr.msk.f32.vlgmr.msra.gmra.mrb[26].mxu0 %vm310_vm6, %v2312_v40 }
0x1104   :  { %3363 = vmatpush3.bf16.msra.mxu0 %v3584_v4  ;;  %3125 = vmatprep.mubr.msk.f32.mxu0 %vm3393_vm3, %v3394_v14 }
0x1105   :  { %3364 = vmatprep.subr.bf16.mxu0 %v3391_v3 }
0x1108   :  { %3366 = vmatpush3.bf16.msra.mxu0 %v3596_v7 }
0x1109   :  { %3367 = vmatprep.subr.bf16.mxu0 %v3391_v3 }
0x110c   :  { %3369 = vmatpush3.bf16.msra.mxu0 %v3608_v10 }
0x110d   :  { %3370 = vmatprep.subr.bf16.mxu0 %v3391_v3 }
0x1110   :  { %3372 = vmatpush3.bf16.msra.mxu0 %v3620_v13 }
0x1111   :  { %3128 = vmatprep.subr.mxu0 %v3394_v14 }
0x11d6   :  { %v2385_v42 = vpop.f32.mrb[26].mxu0 }
0x11d7   :  { %v2396_v4 = vrot.slane %v2385_v42, %v3666_v55  ;;  %v3108_v43 = vpop.f32.mrb[27].mxu0 }
0x11d8   :  { %v2701_v43 = vrot.slane %v2693_v37, %v3669_v58 }
0x11d9   :  { %v2397_v44 = vcombine.high %v2396_v4, %v2396_v4  ;;  %v2404_v45 = vrot.slane %v2396_v4, %v3666_v55  ;;  %v2697_v4 = vrot.slane %v2686_v36, %v3669_v58 }
0x11db   :  { %v2411_v47 = vrot.slane %v2397_v44, %v3666_v55  ;;  %v2415_v7 = vrot.slane %v2404_v45, %v3669_v58 }
0x11dd   :  { %v2419_v48 = vrot.slane %v2411_v47, %v3669_v58  ;;  %v2422_v10 = vsub.f32 %v2215_v17, %v2415_v7  ;;  %v2423_v49 = vsub.f32 %v2216_v5, %v2415_v7 }
0x11df   :  { %v2424_v3 = vsub.f32 %v2217_v22, %v2419_v48  ;;  %v2425_v50 = vsub.f32 %v2218_v24, %v2419_v48  ;;  %v2426_v13 = vmul.f32 %v2422_v10, %v2422_v10  ;;  %v2427_v51 = vmul.f32 %v2423_v49, %v2423_v49 }
0x11e1   :  { %v2428_v52 = vmul.f32 %v2424_v3, %v2424_v3  ;;  %v2429_v53 = vmul.f32 %v2425_v50, %v2425_v50  ;;  %v2430_v54 = vsel %vm104_vm1, %v2426_v13, 0.0  ;;  %v2431_v56 = vsel %vm104_vm1, %v2427_v51, 0.0 }
0x11e2   :  { %v2432_v57 = vadd.f32 %v2431_v56, %v2430_v54 }
0x11e3   :  { %v2439_v1 = vsel %vm104_vm1, %v2428_v52, 0.0  ;;  %v2440_v59 = vsel %vm104_vm1, %v2429_v53, 0.0 }
0x11e4   :  { %v2433_v60 = vrot.slane %v2432_v57, 4  ;;  %v2441_v61 = vadd.f32 %v2440_v59, %v2439_v1 }
0x11e6   :  { %v2434_v15 = vadd.f32 %v2433_v60, %v2432_v57  ;;  %v2442_v16 = vrot.slane %v2441_v61, 4 }
0x11e8   :  { %v2435_v17 = vrot.slane %v2434_v15, 2  ;;  %v2443_v18 = vadd.f32 %v2442_v16, %v2441_v61 }
0x11ea   :  { %v2436_v5 = vadd.f32 %v2435_v17, %v2434_v15  ;;  %v2444_v63 = vrot.slane %v2443_v18, 2 }
0x11ec   :  { %v2437_v0 = vrot.slane %v2436_v5, 1  ;;  %v2445_v8 = vadd.f32 %v2444_v63, %v2443_v18 }
0x11ee   :  { %v2446_v11 = vrot.slane %v2445_v8, 1  ;;  %v2438_v19 = vadd.f32 %v2437_v0, %v2436_v5 }
0x11f0   :  { %v2447_v20 = vadd.f32 %v2446_v11, %v2445_v8 }
0x11f2   :  { %v2450_v21 = vsel %vm236_vm4, %v2447_v20, %v2438_v19 }
0x11f3   :  { %3126 = vmatmul.mubr.msk.f32.vlgmr.msra.gmra.mrb[28].mxu0 %vm104_vm1, %v2450_v21 }
0x11f4   :  { %3129 = vmatpush3.msk.msra.mxu0 %vm314_vm5, %v4124_v2  ;;  %3130 = vmatprep.mubr.msk.f32.mxu0 %vm3393_vm3, %v3394_v14 }
0x12c6   :  { %v2519_v22 = vpop.f32.mrb[28].mxu0 }
0x12c7   :  { %v2520_v46 = vadd.f32 1e-05, %v2519_v22  ;;  %v3127_v23 = vpop.f32.mrb[29].mxu0 }
0x12c9   :  { %3384 = vrsqrt.f32 %v2520_v46 }
0x12d3   :  { %v3385_v24 = vpop.eup %3384 }
0x12d4   :  { %3131 = vmatmul.mubr.msk.f32.vlgmr.msra.gmra.mrb[30].mxu0 %vm310_vm6, %v3385_v24 }
0x13a7   :  { %v2593_v2 = vpop.f32.mrb[30].mxu0 }
0x13a8   :  { %v2604_v14 = vrot.slane %v2593_v2, %v3666_v55  ;;  %v3132_v34 = vpop.f32.mrb[31].mxu0 }
0x13aa   :  { %v2605_v30 = vcombine.high %v2604_v14, %v2604_v14  ;;  %v2612_v31 = vrot.slane %v2604_v14, %v3666_v55 }
0x13ac   :  { %v2619_v38 = vrot.slane %v2605_v30, %v3666_v55  ;;  %v2623_v39 = vrot.slane %v2612_v31, %v3669_v58 }
0x13ae   :  { %v2627_v40 = vrot.slane %v2619_v38, %v3669_v58  ;;  %v2630_v41 = vmul.f32 %v2623_v39, %v2422_v10  ;;  %v2631_v42 = vmul.f32 %v2623_v39, %v2423_v49 }
0x13b0   :  { %v2632_v44 = vmul.f32 %v2627_v40, %v2424_v3  ;;  %v2633_v45 = vmul.f32 %v2627_v40, %v2425_v50  ;;  %v2667_v47 = vmul.f32 %v2660_v33, %v2630_v41  ;;  %v2668_v7 = vmul.f32 %v2660_v33, %v2631_v42 }
0x13b2   :  { %v2669_v48 = vmul.f32 %v2664_v32, %v2632_v44  ;;  %v2670_v55 = vmul.f32 %v2664_v32, %v2633_v45  ;;  %v2704_v13 = vadd.f32 %v2697_v4, %v2667_v47  ;;  %v2705_v51 = vadd.f32 %v2697_v4, %v2668_v7 }
0x13b4   :  { %v2706_v52 = vadd.f32 %v2701_v43, %v2669_v48  ;;  %v2707_v53 = vadd.f32 %v2701_v43, %v2670_v55  ;;  %v2708_v54 = vadd.f32 %v2704_v13, %v4015_v6  ;;  %v2709_v56 = vadd.f32 %v2705_v51, %v4010_v62 }
0x13b6   :  { %v2710_v10 = vadd.f32 %v2706_v52, %v4032_v12  ;;  %v2711_v49 = vadd.f32 %v2707_v53, %v4027_v9  ;;  %2712 = vst.msk [vmem:[%s4345_s7] sm:$0xff] %vm104_vm1, %v2708_v54  ;;  %2713 = vst.msk [vmem:[%s4345_s7 + $0x8] sm:$0xff] %vm104_vm1, %v2709_v56 }
0x13b8   :  { %2714 = vst.msk [vmem:[%s4345_s7 + $0x10] sm:$0xff] %vm104_vm1, %v2710_v10  ;;  %2715 = vst.msk [vmem:[%s4345_s7 + $0x18] sm:$0xff] %vm104_vm1, %v2711_v49 }

</bundles_post_ra>
